<compile_context>
chip_gen: v7x
topology: tpu7x:2x2x1
jax: 0.10.0
libtpu: 0.0.40
codegen_flags: <defaults>
</compile_context>

<pallas_src>
import functools
import math

import numpy as np
import jax
import jax.numpy as jnp
from jax.experimental import pallas as pl
from jax.experimental.pallas import tpu as pltpu  # noqa: F401  (kept for TPU-specific tuning hooks)


HEAD_PAD = 128  # lane-dense padded width for the fused hierarchical heads


# ----------------------------- Fused Pallas kernel ---------------------------

def _fused_bert_kernel(B, S, nL, nH, Dh,
                       h0_ref, mask_ref,
                       emb_g_ref, emb_b_ref,
                       wqkv_ref, bqkv_ref,
                       wo_ref, bo_ref,
                       ln1_g_ref, ln1_b_ref,
                       wi_ref, bi_ref,
                       wo2_ref, bo2_ref,
                       ln2_g_ref, ln2_b_ref,
                       pool_w_ref, pool_b_ref,
                       head_w_ref, head_b_ref,
                       logits_ref):
    """Single invocation: whole batch, all layers, pooler and fused heads in VMEM."""
    H = nH * Dh
    BS = B * S
    HP = logits_ref.shape[-1]
    bf = jnp.bfloat16

    def ln(x, g, b, eps=1e-12):
        # f32 statistics (v5e has no bf16 VPU/EUP); bf16 residual stream out.
        mu = jnp.mean(x, axis=-1, keepdims=True)
        xc = x - mu
        var = jnp.mean(xc * xc, axis=-1, keepdims=True)
        return (xc * jax.lax.rsqrt(var + eps) * g + b).astype(bf)

    def mm(x, w_bf16):
        # bf16 operands, f32 accumulation on the MXU
        return jnp.dot(x.astype(bf), w_bf16, preferred_element_type=jnp.float32)

    h = ln(h0_ref[...], emb_g_ref[...], emb_b_ref[...])            # [BS, H] bf16
    m = mask_ref[...]                                              # [B, 1, S] additive mask

    for l in range(nL):                                            # nL = 2, unrolled
        # Fused QKV projection (1/sqrt(Dh) pre-folded into Q weight/bias); one bf16 cast.
        qkv = ((mm(h, wqkv_ref[l]) + bqkv_ref[l])
               .reshape(B, S, 3 * H).astype(bf))                   # [B, S, 3H]

        # Attention: QK^T / PV batched over the batch dim; per-head results are
        # accumulated straight into the output projection (no lane-axis concat).
        wo_l = wo_ref[l]                                           # [H, H] bf16
        acc = h.astype(jnp.float32) + bo_ref[l]                    # residual + out-proj bias
        for hh in range(nH):                                       # nH = 2, unrolled
            q = qkv[:, :, hh * Dh:(hh + 1) * Dh]                   # [B, S, Dh]
            k = qkv[:, :, H + hh * Dh:H + (hh + 1) * Dh]
            v = qkv[:, :, 2 * H + hh * Dh:2 * H + (hh + 1) * Dh]
            s = jnp.einsum('bqd,bkd->bqk', q, k,
                           preferred_element_type=jnp.float32)     # [B, S, S]
            s = s + m
            s = s - jnp.max(s, axis=-1, keepdims=True)
            p = jnp.exp(s)                                         # f32 EUP
            p = p / jnp.sum(p, axis=-1, keepdims=True)             # exact softmax
            ctx = jnp.einsum('bqk,bkd->bqd', p.astype(bf), v,
                             preferred_element_type=jnp.float32)   # [B, S, Dh]
            acc = acc + jnp.dot(ctx.reshape(BS, Dh).astype(bf),
                                wo_l[hh * Dh:(hh + 1) * Dh, :],
                                preferred_element_type=jnp.float32)
        h = ln(acc, ln1_g_ref[l], ln1_b_ref[l])                    # [BS, H] bf16

        # FFN + residual + LayerNorm.
        # (tanh-approx GELU; HF BERT default is erf GELU -> tiny numerical divergence)
        inter = jax.nn.gelu(mm(h, wi_ref[l]) + bi_ref[l], approximate=True)
        h = ln(mm(inter, wo2_ref[l]) + bo2_ref[l] + h.astype(jnp.float32),
               ln2_g_ref[l], ln2_b_ref[l])

    # Pooler + fused hierarchical heads on every row (below MXU minimum granularity
    # anyway), then keep only the CLS row of each example (tile-aligned f32 select).
    pooled = jnp.tanh(mm(h, pool_w_ref[...]) + pool_b_ref[...])    # [BS, H] f32
    logits = mm(pooled, head_w_ref[...]) + head_b_ref[...]         # [BS, HEAD_PAD] f32
    logits_ref[...] = logits.reshape(B, S, HP)[:, 0, :]            # [B, HEAD_PAD]


def make_fused_bert_call(cfg):
    B, S, H = cfg["batch_size"], cfg["seq_len"], cfg["hidden"]
    nH, nL = cfg["n_heads"], cfg["n_layers"]
    Dh = H // nH
    kernel = functools.partial(_fused_bert_kernel, B, S, nL, nH, Dh)
    # Gridless call: whole batch + all (tiny) weights live in VMEM for one invocation.
    # No pipeline machinery -> no per-step overhead, no double-buffered weight copies.
    return pl.pallas_call(
        kernel,
        out_shape=jax.ShapeDtypeStruct((B, HEAD_PAD), jnp.float32),
    )


# --------------------------- Tree tools (host glue) ---------------------------

def get_subtrees(tree):
    subs = [tree]
    for child in tree[1]:
        if isinstance(child, tuple):
            subs.extend(get_subtrees(child))
    return subs


def build_value_to_path_and_nodes(tree):
    subs = get_subtrees(tree)
    idx_of = {id(st): i for i, st in enumerate(subs)}
    d = {}

    def walk(node, path, nodes):
        n_idx = idx_of[id(node)]
        for ci, child in enumerate(node[1]):
            if isinstance(child, tuple):
                walk(child, path + [ci], nodes + [n_idx])
            else:
                d[child] = (path + [ci], nodes + [n_idx])

    walk(tree, [], [])
    return d


# ------------------------------ Parameter init --------------------------------

def _dense(key, fan_in, fan_out):
    w = jax.random.normal(key, (fan_in, fan_out), jnp.float32) * 0.02
    b = jnp.zeros((fan_out,), jnp.float32)
    return w, b


def init_params(key, cfg):
    # TODO(synk): BertModel.from_pretrained weight loading has no in-script equivalent;
    # weights are initialized deterministically instead.
    H, nL, I = cfg["hidden"], cfg["n_layers"], cfg["intermediate"]
    keys = iter(jax.random.split(key, 8 + nL * 6 + len(cfg["head_dims"])))
    p = {}
    p["word_emb"] = jax.random.normal(next(keys), (cfg["vocab"], H), jnp.float32) * 0.02
    p["pos_emb"] = jax.random.normal(next(keys), (cfg["max_pos"], H), jnp.float32) * 0.02
    p["type_emb"] = jax.random.normal(next(keys), (2, H), jnp.float32) * 0.02
    p["emb_ln_g"] = jnp.ones((H,), jnp.float32)
    p["emb_ln_b"] = jnp.zeros((H,), jnp.float32)
    layers = []
    for _ in range(nL):
        lp = {}
        lp["wq"], lp["bq"] = _dense(next(keys), H, H)
        lp["wk"], lp["bk"] = _dense(next(keys), H, H)
        lp["wv"], lp["bv"] = _dense(next(keys), H, H)
        lp["wo"], lp["bo"] = _dense(next(keys), H, H)
        lp["ln1_g"], lp["ln1_b"] = jnp.ones((H,), jnp.float32), jnp.zeros((H,), jnp.float32)
        lp["wi"], lp["bi"] = _dense(next(keys), H, I)
        lp["wo2"], lp["bo2"] = _dense(next(keys), I, H)
        lp["ln2_g"], lp["ln2_b"] = jnp.ones((H,), jnp.float32), jnp.zeros((H,), jnp.float32)
        layers.append(lp)
    p["layers"] = layers
    p["pool_w"], p["pool_b"] = _dense(next(keys), H, H)
    hw, hb = [], []
    for n_out in cfg["head_dims"]:
        w, b = _dense(next(keys), H, n_out)
        hw.append(w)
        hb.append(b)
    p["head_w"] = jnp.concatenate(hw, axis=1)          # [H, sum(head_dims)]
    p["head_b"] = jnp.concatenate(hb, axis=0)          # [sum(head_dims)]
    return p


def pack_params(params, cfg):
    """Stack per-layer weights, fuse QKV (with the attention scale folded into Q),
    cast matmul weights to bf16, pad the fused heads to 128 lanes."""
    bf = jnp.bfloat16
    L = params["layers"]
    H = cfg["hidden"]
    Dh = H // cfg["n_heads"]
    scale = 1.0 / math.sqrt(Dh)
    total = cfg["head_offsets"][-1]
    head_w = jnp.zeros((H, HEAD_PAD), jnp.float32).at[:, :total].set(params["head_w"])
    head_b = jnp.zeros((1, HEAD_PAD), jnp.float32).at[:, :total].set(params["head_b"][None, :])
    return dict(
        emb_g=params["emb_ln_g"][None, :],
        emb_b=params["emb_ln_b"][None, :],
        # 1/sqrt(Dh) folded into the Q third of the fused QKV weight and bias.
        wqkv=jnp.stack([jnp.concatenate([lp["wq"] * scale, lp["wk"], lp["wv"]], axis=1)
                        for lp in L]).astype(bf),
        bqkv=jnp.stack([jnp.concatenate([lp["bq"] * scale, lp["bk"], lp["bv"]])[None, :]
                        for lp in L]),
        wo=jnp.stack([lp["wo"] for lp in L]).astype(bf),
        bo=jnp.stack([lp["bo"][None, :] for lp in L]),
        ln1_g=jnp.stack([lp["ln1_g"][None, :] for lp in L]),
        ln1_b=jnp.stack([lp["ln1_b"][None, :] for lp in L]),
        wi=jnp.stack([lp["wi"] for lp in L]).astype(bf),
        bi=jnp.stack([lp["bi"][None, :] for lp in L]),
        wo2=jnp.stack([lp["wo2"] for lp in L]).astype(bf),
        bo2=jnp.stack([lp["bo2"][None, :] for lp in L]),
        ln2_g=jnp.stack([lp["ln2_g"][None, :] for lp in L]),
        ln2_b=jnp.stack([lp["ln2_b"][None, :] for lp in L]),
        pool_w=params["pool_w"].astype(bf),
        pool_b=params["pool_b"][None, :],
        head_w=head_w.astype(bf),
        head_b=head_b,
    )


# ------------------------------ Model forward ----------------------------------

def make_logits_fn(cfg):
    call = make_fused_bert_call(cfg)
    B, S, H = cfg["batch_size"], cfg["seq_len"], cfg["hidden"]
    total = cfg["head_offsets"][-1]

    @jax.jit
    def logits_fn(packed, word_emb, pos_emb, type_emb, input_ids, attention_mask):
        # Embedding gather + sum is XLA glue; everything after runs in one Pallas kernel.
        word = jnp.take(word_emb, input_ids, axis=0)                        # [B,S,H]
        # token_type_ids default to zeros in the reference forward (self.bert(context, mask)).
        h0 = word + pos_emb[:S][None, :, :] + type_emb[0][None, None, :]
        h0 = h0.reshape(B * S, H)                                           # fold batch into M
        add_mask = ((1.0 - attention_mask.astype(jnp.float32)) * -10000.0).reshape(B, 1, S)
        out = call(h0, add_mask,
                   packed["emb_g"], packed["emb_b"],
                   packed["wqkv"], packed["bqkv"],
                   packed["wo"], packed["bo"],
                   packed["ln1_g"], packed["ln1_b"],
                   packed["wi"], packed["bi"],
                   packed["wo2"], packed["bo2"],
                   packed["ln2_g"], packed["ln2_b"],
                   packed["pool_w"], packed["pool_b"],
                   packed["head_w"], packed["head_b"])
        return out[:, :total]                                               # [B, sum(head_dims)]

    return logits_fn


def hierarchical_forward(logits_fn, packed, params, cfg, x, label, mode=None):
    """Mirror of HierarchicalModel.forward: x = (context, _, mask)."""
    context, _, mask = x
    all_logits = logits_fn(packed, params["word_emb"], params["pos_emb"],
                           params["type_emb"], context, mask)
    # Single host transfer for the labels (no per-example device->host int() syncs);
    # tree-path slicing is pure host bookkeeping on lazy device-array slices.
    leaves = np.asarray(jax.device_get(label))[:, 1]
    offs = cfg["head_offsets"]
    predicts, predicts_list = [], []
    for b in range(cfg["batch_size"]):
        _, nodes = cfg["value_to_path_and_nodes_dict"][int(leaves[b])]
        plist = []
        if mode == "evl":
            plist = [all_logits[b, offs[n]:offs[n + 1]] for n in range(cfg["count_nodes"])]
        predicts.append([all_logits[b, offs[n]:offs[n + 1]] for n in nodes])
        predicts_list.append(plist)
    return predicts, predicts_list


# ------------------------------------ Main --------------------------------------

if __name__ == "__main__":
    # small label tree: root -> {A -> {0,1}, B -> {2,3,4}}
    TREE = ("root", [("A", [0, 1]), ("B", [2, 3, 4])])
    subtrees = get_subtrees(TREE)
    cfg = {
        "batch_size": 2,
        "seq_len": 8,
        "hidden": 32,
        "n_heads": 2,
        "n_layers": 2,
        "intermediate": 128,
        "vocab": 100,
        "max_pos": 64,
        "tree": TREE,
        "count_nodes": len(subtrees),
        "head_dims": [len(st[1]) for st in subtrees],
        "value_to_path_and_nodes_dict": build_value_to_path_and_nodes(TREE),
    }
    offs = [0]
    for d in cfg["head_dims"]:
        offs.append(offs[-1] + d)
    cfg["head_offsets"] = offs

    key = jax.random.PRNGKey(0)
    kp, kc = jax.random.split(key)
    params = init_params(kp, cfg)
    packed = pack_params(params, cfg)
    logits_fn = make_logits_fn(cfg)

    B, S = cfg["batch_size"], cfg["seq_len"]
    context = jax.random.randint(kc, (B, S), 0, cfg["vocab"], dtype=jnp.int32)
    mask = jnp.array([[1] * S, [1] * (S - 2) + [0] * 2], dtype=jnp.int32)
    seq_len_placeholder = jnp.full((B,), S, dtype=jnp.int32)   # x[1] is unused, as in torch
    label = jnp.array([[0, 1], [0, 4]], dtype=jnp.int32)       # label[:, 1] = leaf value

    predicts, predicts_list = hierarchical_forward(
        logits_fn, packed, params, cfg,
        (context, seq_len_placeholder, mask), label, mode="evl"
    )
    jax.block_until_ready((predicts, predicts_list))
    print("KERNEL_OK")
</pallas_src>

<mosaic_0001>
module attributes {stable_mosaic.version = 11 : i64} {
  func.func @_fused_bert_kernel(%arg0: memref<16x32xf32, #tpu.memory_space<vmem>>, %arg1: memref<2x1x8xf32, #tpu.memory_space<vmem>>, %arg2: memref<1x32xf32, #tpu.memory_space<vmem>>, %arg3: memref<1x32xf32, #tpu.memory_space<vmem>>, %arg4: memref<2x32x96xbf16, #tpu.memory_space<vmem>>, %arg5: memref<2x1x96xf32, #tpu.memory_space<vmem>>, %arg6: memref<2x32x32xbf16, #tpu.memory_space<vmem>>, %arg7: memref<2x1x32xf32, #tpu.memory_space<vmem>>, %arg8: memref<2x1x32xf32, #tpu.memory_space<vmem>>, %arg9: memref<2x1x32xf32, #tpu.memory_space<vmem>>, %arg10: memref<2x32x128xbf16, #tpu.memory_space<vmem>>, %arg11: memref<2x1x128xf32, #tpu.memory_space<vmem>>, %arg12: memref<2x128x32xbf16, #tpu.memory_space<vmem>>, %arg13: memref<2x1x32xf32, #tpu.memory_space<vmem>>, %arg14: memref<2x1x32xf32, #tpu.memory_space<vmem>>, %arg15: memref<2x1x32xf32, #tpu.memory_space<vmem>>, %arg16: memref<32x32xbf16, #tpu.memory_space<vmem>>, %arg17: memref<1x32xf32, #tpu.memory_space<vmem>>, %arg18: memref<32x128xbf16, #tpu.memory_space<vmem>>, %arg19: memref<1x128xf32, #tpu.memory_space<vmem>>, %arg20: memref<2x128xf32, #tpu.memory_space<vmem>>) attributes {dimension_semantics = [], scalar_prefetch = 0 : i64, scratch_operands = 0 : i64, tpu.core_type = #tpu.core_type<tc>} {
    %c0 = arith.constant 0 : index
    %c0_0 = arith.constant 0 : index
    %0 = vector.load %arg0[%c0, %c0_0] : memref<16x32xf32, #tpu.memory_space<vmem>>, vector<16x32xf32>
    %c0_1 = arith.constant 0 : index
    %c0_2 = arith.constant 0 : index
    %1 = vector.load %arg2[%c0_1, %c0_2] : memref<1x32xf32, #tpu.memory_space<vmem>>, vector<1x32xf32>
    %c0_3 = arith.constant 0 : index
    %c0_4 = arith.constant 0 : index
    %2 = vector.load %arg3[%c0_3, %c0_4] : memref<1x32xf32, #tpu.memory_space<vmem>>, vector<1x32xf32>
    %cst = arith.constant dense<0.000000e+00> : vector<16xf32>
    %3 = vector.multi_reduction <add>, %0, %cst [1] : vector<16x32xf32> to vector<16xf32>
    %4 = vector.shape_cast %3 : vector<16xf32> to vector<16x1xf32>
    %cst_5 = arith.constant 3.200000e+01 : f32
    %5 = vector.broadcast %cst_5 : f32 to vector<16x1xf32>
    %6 = arith.divf %4, %5 : vector<16x1xf32>
    %7 = vector.broadcast %6 : vector<16x1xf32> to vector<16x32xf32>
    %8 = arith.subf %0, %7 : vector<16x32xf32>
    %9 = arith.mulf %8, %8 : vector<16x32xf32>
    %cst_6 = arith.constant dense<0.000000e+00> : vector<16xf32>
    %10 = vector.multi_reduction <add>, %9, %cst_6 [1] : vector<16x32xf32> to vector<16xf32>
    %11 = vector.shape_cast %10 : vector<16xf32> to vector<16x1xf32>
    %cst_7 = arith.constant 3.200000e+01 : f32
    %12 = vector.broadcast %cst_7 : f32 to vector<16x1xf32>
    %13 = arith.divf %11, %12 : vector<16x1xf32>
    %cst_8 = arith.constant 9.99999996E-13 : f32
    %14 = vector.broadcast %cst_8 : f32 to vector<16x1xf32>
    %15 = arith.addf %13, %14 : vector<16x1xf32>
    %16 = math.rsqrt %15 : vector<16x1xf32>
    %17 = vector.broadcast %16 : vector<16x1xf32> to vector<16x32xf32>
    %18 = arith.mulf %8, %17 : vector<16x32xf32>
    %19 = vector.broadcast %1 : vector<1x32xf32> to vector<16x32xf32>
    %20 = arith.mulf %18, %19 : vector<16x32xf32>
    %21 = vector.broadcast %2 : vector<1x32xf32> to vector<16x32xf32>
    %22 = arith.addf %20, %21 : vector<16x32xf32>
    %23 = arith.truncf %22 : vector<16x32xf32> to vector<16x32xbf16>
    %c0_9 = arith.constant 0 : index
    %c0_10 = arith.constant 0 : index
    %c0_11 = arith.constant 0 : index
    %24 = vector.load %arg1[%c0_9, %c0_10, %c0_11] : memref<2x1x8xf32, #tpu.memory_space<vmem>>, vector<2x1x8xf32>
    %c0_12 = arith.constant 0 : index
    %c0_13 = arith.constant 0 : index
    %c0_14 = arith.constant 0 : index
    %25 = vector.load %arg4[%c0_12, %c0_13, %c0_14] : memref<2x32x96xbf16, #tpu.memory_space<vmem>>, vector<1x32x96xbf16>
    %26 = vector.shape_cast %25 : vector<1x32x96xbf16> to vector<32x96xbf16>
    %cst_15 = arith.constant dense<0.000000e+00> : vector<16x96xf32>
    %27 = tpu.matmul %23, %26, %cst_15 {dimension_numbers = #tpu.dot_dimension_numbers<[1], [0], [0], [1], [0, 0, 1, 1], [], []>} : vector<16x32xbf16>, vector<32x96xbf16>, vector<16x96xf32> -> vector<16x96xf32>
    %c0_16 = arith.constant 0 : index
    %c0_17 = arith.constant 0 : index
    %c0_18 = arith.constant 0 : index
    %28 = vector.load %arg5[%c0_16, %c0_17, %c0_18] : memref<2x1x96xf32, #tpu.memory_space<vmem>>, vector<1x1x96xf32>
    %29 = vector.shape_cast %28 : vector<1x1x96xf32> to vector<1x96xf32>
    %30 = vector.broadcast %29 : vector<1x96xf32> to vector<16x96xf32>
    %31 = arith.addf %27, %30 : vector<16x96xf32>
    %32 = vector.shape_cast %31 : vector<16x96xf32> to vector<2x8x96xf32>
    %33 = arith.truncf %32 : vector<2x8x96xf32> to vector<2x8x96xbf16>
    %c0_19 = arith.constant 0 : index
    %c0_20 = arith.constant 0 : index
    %c0_21 = arith.constant 0 : index
    %34 = vector.load %arg6[%c0_19, %c0_20, %c0_21] : memref<2x32x32xbf16, #tpu.memory_space<vmem>>, vector<1x32x32xbf16>
    %35 = vector.shape_cast %34 : vector<1x32x32xbf16> to vector<32x32xbf16>
    %36 = arith.extf %23 : vector<16x32xbf16> to vector<16x32xf32>
    %c0_22 = arith.constant 0 : index
    %c0_23 = arith.constant 0 : index
    %c0_24 = arith.constant 0 : index
    %37 = vector.load %arg7[%c0_22, %c0_23, %c0_24] : memref<2x1x32xf32, #tpu.memory_space<vmem>>, vector<1x1x32xf32>
    %38 = vector.shape_cast %37 : vector<1x1x32xf32> to vector<1x32xf32>
    %39 = vector.broadcast %38 : vector<1x32xf32> to vector<16x32xf32>
    %40 = arith.addf %36, %39 : vector<16x32xf32>
    %41 = vector.extract_strided_slice %33 {offsets = [0, 0, 0], sizes = [2, 8, 16], strides = [1, 1, 1]} : vector<2x8x96xbf16> to vector<2x8x16xbf16>
    %42 = vector.extract_strided_slice %33 {offsets = [0, 0, 32], sizes = [2, 8, 16], strides = [1, 1, 1]} : vector<2x8x96xbf16> to vector<2x8x16xbf16>
    %43 = vector.extract_strided_slice %33 {offsets = [0, 0, 64], sizes = [2, 8, 16], strides = [1, 1, 1]} : vector<2x8x96xbf16> to vector<2x8x16xbf16>
    "tpu.trace_start"() <{level = 10 : i32, message = "bqd,bkd->bqk"}> : () -> ()
    %cst_25 = arith.constant dense<0.000000e+00> : vector<2x8x8xf32>
    %44 = tpu.matmul %41, %42, %cst_25 {dimension_numbers = #tpu.dot_dimension_numbers<[2], [2], [1], [1], [0, 0, 0, 1, 1, 1], [0], [0]>} : vector<2x8x16xbf16>, vector<2x8x16xbf16>, vector<2x8x8xf32> -> vector<2x8x8xf32>
    "tpu.trace_stop"() : () -> ()
    %45 = vector.broadcast %24 : vector<2x1x8xf32> to vector<2x8x8xf32>
    %46 = arith.addf %44, %45 : vector<2x8x8xf32>
    %cst_26 = arith.constant dense<0xFF800000> : vector<2x8xf32>
    %47 = vector.multi_reduction <maximumf>, %46, %cst_26 [2] : vector<2x8x8xf32> to vector<2x8xf32>
    %48 = vector.shape_cast %47 : vector<2x8xf32> to vector<2x8x1xf32>
    %49 = vector.broadcast %48 : vector<2x8x1xf32> to vector<2x8x8xf32>
    %50 = arith.subf %46, %49 : vector<2x8x8xf32>
    %51 = math.exp %50 : vector<2x8x8xf32>
    %cst_27 = arith.constant dense<0.000000e+00> : vector<2x8xf32>
    %52 = vector.multi_reduction <add>, %51, %cst_27 [2] : vector<2x8x8xf32> to vector<2x8xf32>
    %53 = vector.shape_cast %52 : vector<2x8xf32> to vector<2x8x1xf32>
    %54 = vector.broadcast %53 : vector<2x8x1xf32> to vector<2x8x8xf32>
    %55 = arith.divf %51, %54 : vector<2x8x8xf32>
    %56 = arith.truncf %55 : vector<2x8x8xf32> to vector<2x8x8xbf16>
    "tpu.trace_start"() <{level = 10 : i32, message = "bqk,bkd->bqd"}> : () -> ()
    %cst_28 = arith.constant dense<0.000000e+00> : vector<2x8x16xf32>
    %57 = tpu.matmul %56, %43, %cst_28 {dimension_numbers = #tpu.dot_dimension_numbers<[2], [1], [1], [2], [0, 0, 0, 1, 1, 2], [0], [0]>} : vector<2x8x8xbf16>, vector<2x8x16xbf16>, vector<2x8x16xf32> -> vector<2x8x16xf32>
    "tpu.trace_stop"() : () -> ()
    %58 = vector.shape_cast %57 : vector<2x8x16xf32> to vector<16x16xf32>
    %59 = arith.truncf %58 : vector<16x16xf32> to vector<16x16xbf16>
    %60 = vector.extract_strided_slice %35 {offsets = [0, 0], sizes = [16, 32], strides = [1, 1]} : vector<32x32xbf16> to vector<16x32xbf16>
    %cst_29 = arith.constant dense<0.000000e+00> : vector<16x32xf32>
    %61 = tpu.matmul %59, %60, %cst_29 {dimension_numbers = #tpu.dot_dimension_numbers<[1], [0], [0], [1], [0, 0, 1, 1], [], []>} : vector<16x16xbf16>, vector<16x32xbf16>, vector<16x32xf32> -> vector<16x32xf32>
    %62 = arith.addf %40, %61 : vector<16x32xf32>
    %63 = vector.extract_strided_slice %33 {offsets = [0, 0, 16], sizes = [2, 8, 16], strides = [1, 1, 1]} : vector<2x8x96xbf16> to vector<2x8x16xbf16>
    %64 = vector.extract_strided_slice %33 {offsets = [0, 0, 48], sizes = [2, 8, 16], strides = [1, 1, 1]} : vector<2x8x96xbf16> to vector<2x8x16xbf16>
    %65 = vector.extract_strided_slice %33 {offsets = [0, 0, 80], sizes = [2, 8, 16], strides = [1, 1, 1]} : vector<2x8x96xbf16> to vector<2x8x16xbf16>
    "tpu.trace_start"() <{level = 10 : i32, message = "bqd,bkd->bqk"}> : () -> ()
    %cst_30 = arith.constant dense<0.000000e+00> : vector<2x8x8xf32>
    %66 = tpu.matmul %63, %64, %cst_30 {dimension_numbers = #tpu.dot_dimension_numbers<[2], [2], [1], [1], [0, 0, 0, 1, 1, 1], [0], [0]>} : vector<2x8x16xbf16>, vector<2x8x16xbf16>, vector<2x8x8xf32> -> vector<2x8x8xf32>
    "tpu.trace_stop"() : () -> ()
    %67 = vector.broadcast %24 : vector<2x1x8xf32> to vector<2x8x8xf32>
    %68 = arith.addf %66, %67 : vector<2x8x8xf32>
    %cst_31 = arith.constant dense<0xFF800000> : vector<2x8xf32>
    %69 = vector.multi_reduction <maximumf>, %68, %cst_31 [2] : vector<2x8x8xf32> to vector<2x8xf32>
    %70 = vector.shape_cast %69 : vector<2x8xf32> to vector<2x8x1xf32>
    %71 = vector.broadcast %70 : vector<2x8x1xf32> to vector<2x8x8xf32>
    %72 = arith.subf %68, %71 : vector<2x8x8xf32>
    %73 = math.exp %72 : vector<2x8x8xf32>
    %cst_32 = arith.constant dense<0.000000e+00> : vector<2x8xf32>
    %74 = vector.multi_reduction <add>, %73, %cst_32 [2] : vector<2x8x8xf32> to vector<2x8xf32>
    %75 = vector.shape_cast %74 : vector<2x8xf32> to vector<2x8x1xf32>
    %76 = vector.broadcast %75 : vector<2x8x1xf32> to vector<2x8x8xf32>
    %77 = arith.divf %73, %76 : vector<2x8x8xf32>
    %78 = arith.truncf %77 : vector<2x8x8xf32> to vector<2x8x8xbf16>
    "tpu.trace_start"() <{level = 10 : i32, message = "bqk,bkd->bqd"}> : () -> ()
    %cst_33 = arith.constant dense<0.000000e+00> : vector<2x8x16xf32>
    %79 = tpu.matmul %78, %65, %cst_33 {dimension_numbers = #tpu.dot_dimension_numbers<[2], [1], [1], [2], [0, 0, 0, 1, 1, 2], [0], [0]>} : vector<2x8x8xbf16>, vector<2x8x16xbf16>, vector<2x8x16xf32> -> vector<2x8x16xf32>
    "tpu.trace_stop"() : () -> ()
    %80 = vector.shape_cast %79 : vector<2x8x16xf32> to vector<16x16xf32>
    %81 = arith.truncf %80 : vector<16x16xf32> to vector<16x16xbf16>
    %82 = vector.extract_strided_slice %35 {offsets = [16, 0], sizes = [16, 32], strides = [1, 1]} : vector<32x32xbf16> to vector<16x32xbf16>
    %cst_34 = arith.constant dense<0.000000e+00> : vector<16x32xf32>
    %83 = tpu.matmul %81, %82, %cst_34 {dimension_numbers = #tpu.dot_dimension_numbers<[1], [0], [0], [1], [0, 0, 1, 1], [], []>} : vector<16x16xbf16>, vector<16x32xbf16>, vector<16x32xf32> -> vector<16x32xf32>
    %84 = arith.addf %62, %83 : vector<16x32xf32>
    %c0_35 = arith.constant 0 : index
    %c0_36 = arith.constant 0 : index
    %c0_37 = arith.constant 0 : index
    %85 = vector.load %arg8[%c0_35, %c0_36, %c0_37] : memref<2x1x32xf32, #tpu.memory_space<vmem>>, vector<1x1x32xf32>
    %86 = vector.shape_cast %85 : vector<1x1x32xf32> to vector<1x32xf32>
    %c0_38 = arith.constant 0 : index
    %c0_39 = arith.constant 0 : index
    %c0_40 = arith.constant 0 : index
    %87 = vector.load %arg9[%c0_38, %c0_39, %c0_40] : memref<2x1x32xf32, #tpu.memory_space<vmem>>, vector<1x1x32xf32>
    %88 = vector.shape_cast %87 : vector<1x1x32xf32> to vector<1x32xf32>
    %cst_41 = arith.constant dense<0.000000e+00> : vector<16xf32>
    %89 = vector.multi_reduction <add>, %84, %cst_41 [1] : vector<16x32xf32> to vector<16xf32>
    %90 = vector.shape_cast %89 : vector<16xf32> to vector<16x1xf32>
    %cst_42 = arith.constant 3.200000e+01 : f32
    %91 = vector.broadcast %cst_42 : f32 to vector<16x1xf32>
    %92 = arith.divf %90, %91 : vector<16x1xf32>
    %93 = vector.broadcast %92 : vector<16x1xf32> to vector<16x32xf32>
    %94 = arith.subf %84, %93 : vector<16x32xf32>
    %95 = arith.mulf %94, %94 : vector<16x32xf32>
    %cst_43 = arith.constant dense<0.000000e+00> : vector<16xf32>
    %96 = vector.multi_reduction <add>, %95, %cst_43 [1] : vector<16x32xf32> to vector<16xf32>
    %97 = vector.shape_cast %96 : vector<16xf32> to vector<16x1xf32>
    %cst_44 = arith.constant 3.200000e+01 : f32
    %98 = vector.broadcast %cst_44 : f32 to vector<16x1xf32>
    %99 = arith.divf %97, %98 : vector<16x1xf32>
    %cst_45 = arith.constant 9.99999996E-13 : f32
    %100 = vector.broadcast %cst_45 : f32 to vector<16x1xf32>
    %101 = arith.addf %99, %100 : vector<16x1xf32>
    %102 = math.rsqrt %101 : vector<16x1xf32>
    %103 = vector.broadcast %102 : vector<16x1xf32> to vector<16x32xf32>
    %104 = arith.mulf %94, %103 : vector<16x32xf32>
    %105 = vector.broadcast %86 : vector<1x32xf32> to vector<16x32xf32>
    %106 = arith.mulf %104, %105 : vector<16x32xf32>
    %107 = vector.broadcast %88 : vector<1x32xf32> to vector<16x32xf32>
    %108 = arith.addf %106, %107 : vector<16x32xf32>
    %109 = arith.truncf %108 : vector<16x32xf32> to vector<16x32xbf16>
    %c0_46 = arith.constant 0 : index
    %c0_47 = arith.constant 0 : index
    %c0_48 = arith.constant 0 : index
    %110 = vector.load %arg10[%c0_46, %c0_47, %c0_48] : memref<2x32x128xbf16, #tpu.memory_space<vmem>>, vector<1x32x128xbf16>
    %111 = vector.shape_cast %110 : vector<1x32x128xbf16> to vector<32x128xbf16>
    %cst_49 = arith.constant dense<0.000000e+00> : vector<16x128xf32>
    %112 = tpu.matmul %109, %111, %cst_49 {dimension_numbers = #tpu.dot_dimension_numbers<[1], [0], [0], [1], [0, 0, 1, 1], [], []>} : vector<16x32xbf16>, vector<32x128xbf16>, vector<16x128xf32> -> vector<16x128xf32>
    %c0_50 = arith.constant 0 : index
    %c0_51 = arith.constant 0 : index
    %c0_52 = arith.constant 0 : index
    %113 = vector.load %arg11[%c0_50, %c0_51, %c0_52] : memref<2x1x128xf32, #tpu.memory_space<vmem>>, vector<1x1x128xf32>
    %114 = vector.shape_cast %113 : vector<1x1x128xf32> to vector<1x128xf32>
    %115 = vector.broadcast %114 : vector<1x128xf32> to vector<16x128xf32>
    %116 = arith.addf %112, %115 : vector<16x128xf32>
    %117 = arith.mulf %116, %116 : vector<16x128xf32>
    %118 = arith.mulf %116, %117 : vector<16x128xf32>
    %cst_53 = arith.constant 4.471500e-02 : f32
    %119 = vector.broadcast %cst_53 : f32 to vector<16x128xf32>
    %120 = arith.mulf %119, %118 : vector<16x128xf32>
    %121 = arith.addf %116, %120 : vector<16x128xf32>
    %cst_54 = arith.constant 0.797884583 : f32
    %122 = vector.broadcast %cst_54 : f32 to vector<16x128xf32>
    %123 = arith.mulf %122, %121 : vector<16x128xf32>
    %124 = math.tanh %123 : vector<16x128xf32>
    %cst_55 = arith.constant 1.000000e+00 : f32
    %125 = vector.broadcast %cst_55 : f32 to vector<16x128xf32>
    %126 = arith.addf %125, %124 : vector<16x128xf32>
    %cst_56 = arith.constant 5.000000e-01 : f32
    %127 = vector.broadcast %cst_56 : f32 to vector<16x128xf32>
    %128 = arith.mulf %127, %126 : vector<16x128xf32>
    %129 = arith.mulf %116, %128 : vector<16x128xf32>
    %c0_57 = arith.constant 0 : index
    %c0_58 = arith.constant 0 : index
    %c0_59 = arith.constant 0 : index
    %130 = vector.load %arg12[%c0_57, %c0_58, %c0_59] : memref<2x128x32xbf16, #tpu.memory_space<vmem>>, vector<1x128x32xbf16>
    %131 = vector.shape_cast %130 : vector<1x128x32xbf16> to vector<128x32xbf16>
    %132 = arith.truncf %129 : vector<16x128xf32> to vector<16x128xbf16>
    %cst_60 = arith.constant dense<0.000000e+00> : vector<16x32xf32>
    %133 = tpu.matmul %132, %131, %cst_60 {dimension_numbers = #tpu.dot_dimension_numbers<[1], [0], [0], [1], [0, 0, 1, 1], [], []>} : vector<16x128xbf16>, vector<128x32xbf16>, vector<16x32xf32> -> vector<16x32xf32>
    %c0_61 = arith.constant 0 : index
    %c0_62 = arith.constant 0 : index
    %c0_63 = arith.constant 0 : index
    %134 = vector.load %arg13[%c0_61, %c0_62, %c0_63] : memref<2x1x32xf32, #tpu.memory_space<vmem>>, vector<1x1x32xf32>
    %135 = vector.shape_cast %134 : vector<1x1x32xf32> to vector<1x32xf32>
    %136 = vector.broadcast %135 : vector<1x32xf32> to vector<16x32xf32>
    %137 = arith.addf %133, %136 : vector<16x32xf32>
    %138 = arith.extf %109 : vector<16x32xbf16> to vector<16x32xf32>
    %139 = arith.addf %137, %138 : vector<16x32xf32>
    %c0_64 = arith.constant 0 : index
    %c0_65 = arith.constant 0 : index
    %c0_66 = arith.constant 0 : index
    %140 = vector.load %arg14[%c0_64, %c0_65, %c0_66] : memref<2x1x32xf32, #tpu.memory_space<vmem>>, vector<1x1x32xf32>
    %141 = vector.shape_cast %140 : vector<1x1x32xf32> to vector<1x32xf32>
    %c0_67 = arith.constant 0 : index
    %c0_68 = arith.constant 0 : index
    %c0_69 = arith.constant 0 : index
    %142 = vector.load %arg15[%c0_67, %c0_68, %c0_69] : memref<2x1x32xf32, #tpu.memory_space<vmem>>, vector<1x1x32xf32>
    %143 = vector.shape_cast %142 : vector<1x1x32xf32> to vector<1x32xf32>
    %cst_70 = arith.constant dense<0.000000e+00> : vector<16xf32>
    %144 = vector.multi_reduction <add>, %139, %cst_70 [1] : vector<16x32xf32> to vector<16xf32>
    %145 = vector.shape_cast %144 : vector<16xf32> to vector<16x1xf32>
    %cst_71 = arith.constant 3.200000e+01 : f32
    %146 = vector.broadcast %cst_71 : f32 to vector<16x1xf32>
    %147 = arith.divf %145, %146 : vector<16x1xf32>
    %148 = vector.broadcast %147 : vector<16x1xf32> to vector<16x32xf32>
    %149 = arith.subf %139, %148 : vector<16x32xf32>
    %150 = arith.mulf %149, %149 : vector<16x32xf32>
    %cst_72 = arith.constant dense<0.000000e+00> : vector<16xf32>
    %151 = vector.multi_reduction <add>, %150, %cst_72 [1] : vector<16x32xf32> to vector<16xf32>
    %152 = vector.shape_cast %151 : vector<16xf32> to vector<16x1xf32>
    %cst_73 = arith.constant 3.200000e+01 : f32
    %153 = vector.broadcast %cst_73 : f32 to vector<16x1xf32>
    %154 = arith.divf %152, %153 : vector<16x1xf32>
    %cst_74 = arith.constant 9.99999996E-13 : f32
    %155 = vector.broadcast %cst_74 : f32 to vector<16x1xf32>
    %156 = arith.addf %154, %155 : vector<16x1xf32>
    %157 = math.rsqrt %156 : vector<16x1xf32>
    %158 = vector.broadcast %157 : vector<16x1xf32> to vector<16x32xf32>
    %159 = arith.mulf %149, %158 : vector<16x32xf32>
    %160 = vector.broadcast %141 : vector<1x32xf32> to vector<16x32xf32>
    %161 = arith.mulf %159, %160 : vector<16x32xf32>
    %162 = vector.broadcast %143 : vector<1x32xf32> to vector<16x32xf32>
    %163 = arith.addf %161, %162 : vector<16x32xf32>
    %164 = arith.truncf %163 : vector<16x32xf32> to vector<16x32xbf16>
    %c1 = arith.constant 1 : index
    %c0_75 = arith.constant 0 : index
    %c0_76 = arith.constant 0 : index
    %165 = vector.load %arg4[%c1, %c0_75, %c0_76] : memref<2x32x96xbf16, #tpu.memory_space<vmem>>, vector<1x32x96xbf16>
    %166 = vector.shape_cast %165 : vector<1x32x96xbf16> to vector<32x96xbf16>
    %cst_77 = arith.constant dense<0.000000e+00> : vector<16x96xf32>
    %167 = tpu.matmul %164, %166, %cst_77 {dimension_numbers = #tpu.dot_dimension_numbers<[1], [0], [0], [1], [0, 0, 1, 1], [], []>} : vector<16x32xbf16>, vector<32x96xbf16>, vector<16x96xf32> -> vector<16x96xf32>
    %c1_78 = arith.constant 1 : index
    %c0_79 = arith.constant 0 : index
    %c0_80 = arith.constant 0 : index
    %168 = vector.load %arg5[%c1_78, %c0_79, %c0_80] : memref<2x1x96xf32, #tpu.memory_space<vmem>>, vector<1x1x96xf32>
    %169 = vector.shape_cast %168 : vector<1x1x96xf32> to vector<1x96xf32>
    %170 = vector.broadcast %169 : vector<1x96xf32> to vector<16x96xf32>
    %171 = arith.addf %167, %170 : vector<16x96xf32>
    %172 = vector.shape_cast %171 : vector<16x96xf32> to vector<2x8x96xf32>
    %173 = arith.truncf %172 : vector<2x8x96xf32> to vector<2x8x96xbf16>
    %c1_81 = arith.constant 1 : index
    %c0_82 = arith.constant 0 : index
    %c0_83 = arith.constant 0 : index
    %174 = vector.load %arg6[%c1_81, %c0_82, %c0_83] : memref<2x32x32xbf16, #tpu.memory_space<vmem>>, vector<1x32x32xbf16>
    %175 = vector.shape_cast %174 : vector<1x32x32xbf16> to vector<32x32xbf16>
    %176 = arith.extf %164 : vector<16x32xbf16> to vector<16x32xf32>
    %c1_84 = arith.constant 1 : index
    %c0_85 = arith.constant 0 : index
    %c0_86 = arith.constant 0 : index
    %177 = vector.load %arg7[%c1_84, %c0_85, %c0_86] : memref<2x1x32xf32, #tpu.memory_space<vmem>>, vector<1x1x32xf32>
    %178 = vector.shape_cast %177 : vector<1x1x32xf32> to vector<1x32xf32>
    %179 = vector.broadcast %178 : vector<1x32xf32> to vector<16x32xf32>
    %180 = arith.addf %176, %179 : vector<16x32xf32>
    %181 = vector.extract_strided_slice %173 {offsets = [0, 0, 0], sizes = [2, 8, 16], strides = [1, 1, 1]} : vector<2x8x96xbf16> to vector<2x8x16xbf16>
    %182 = vector.extract_strided_slice %173 {offsets = [0, 0, 32], sizes = [2, 8, 16], strides = [1, 1, 1]} : vector<2x8x96xbf16> to vector<2x8x16xbf16>
    %183 = vector.extract_strided_slice %173 {offsets = [0, 0, 64], sizes = [2, 8, 16], strides = [1, 1, 1]} : vector<2x8x96xbf16> to vector<2x8x16xbf16>
    "tpu.trace_start"() <{level = 10 : i32, message = "bqd,bkd->bqk"}> : () -> ()
    %cst_87 = arith.constant dense<0.000000e+00> : vector<2x8x8xf32>
    %184 = tpu.matmul %181, %182, %cst_87 {dimension_numbers = #tpu.dot_dimension_numbers<[2], [2], [1], [1], [0, 0, 0, 1, 1, 1], [0], [0]>} : vector<2x8x16xbf16>, vector<2x8x16xbf16>, vector<2x8x8xf32> -> vector<2x8x8xf32>
    "tpu.trace_stop"() : () -> ()
    %185 = vector.broadcast %24 : vector<2x1x8xf32> to vector<2x8x8xf32>
    %186 = arith.addf %184, %185 : vector<2x8x8xf32>
    %cst_88 = arith.constant dense<0xFF800000> : vector<2x8xf32>
    %187 = vector.multi_reduction <maximumf>, %186, %cst_88 [2] : vector<2x8x8xf32> to vector<2x8xf32>
    %188 = vector.shape_cast %187 : vector<2x8xf32> to vector<2x8x1xf32>
    %189 = vector.broadcast %188 : vector<2x8x1xf32> to vector<2x8x8xf32>
    %190 = arith.subf %186, %189 : vector<2x8x8xf32>
    %191 = math.exp %190 : vector<2x8x8xf32>
    %cst_89 = arith.constant dense<0.000000e+00> : vector<2x8xf32>
    %192 = vector.multi_reduction <add>, %191, %cst_89 [2] : vector<2x8x8xf32> to vector<2x8xf32>
    %193 = vector.shape_cast %192 : vector<2x8xf32> to vector<2x8x1xf32>
    %194 = vector.broadcast %193 : vector<2x8x1xf32> to vector<2x8x8xf32>
    %195 = arith.divf %191, %194 : vector<2x8x8xf32>
    %196 = arith.truncf %195 : vector<2x8x8xf32> to vector<2x8x8xbf16>
    "tpu.trace_start"() <{level = 10 : i32, message = "bqk,bkd->bqd"}> : () -> ()
    %cst_90 = arith.constant dense<0.000000e+00> : vector<2x8x16xf32>
    %197 = tpu.matmul %196, %183, %cst_90 {dimension_numbers = #tpu.dot_dimension_numbers<[2], [1], [1], [2], [0, 0, 0, 1, 1, 2], [0], [0]>} : vector<2x8x8xbf16>, vector<2x8x16xbf16>, vector<2x8x16xf32> -> vector<2x8x16xf32>
    "tpu.trace_stop"() : () -> ()
    %198 = vector.shape_cast %197 : vector<2x8x16xf32> to vector<16x16xf32>
    %199 = arith.truncf %198 : vector<16x16xf32> to vector<16x16xbf16>
    %200 = vector.extract_strided_slice %175 {offsets = [0, 0], sizes = [16, 32], strides = [1, 1]} : vector<32x32xbf16> to vector<16x32xbf16>
    %cst_91 = arith.constant dense<0.000000e+00> : vector<16x32xf32>
    %201 = tpu.matmul %199, %200, %cst_91 {dimension_numbers = #tpu.dot_dimension_numbers<[1], [0], [0], [1], [0, 0, 1, 1], [], []>} : vector<16x16xbf16>, vector<16x32xbf16>, vector<16x32xf32> -> vector<16x32xf32>
    %202 = arith.addf %180, %201 : vector<16x32xf32>
    %203 = vector.extract_strided_slice %173 {offsets = [0, 0, 16], sizes = [2, 8, 16], strides = [1, 1, 1]} : vector<2x8x96xbf16> to vector<2x8x16xbf16>
    %204 = vector.extract_strided_slice %173 {offsets = [0, 0, 48], sizes = [2, 8, 16], strides = [1, 1, 1]} : vector<2x8x96xbf16> to vector<2x8x16xbf16>
    %205 = vector.extract_strided_slice %173 {offsets = [0, 0, 80], sizes = [2, 8, 16], strides = [1, 1, 1]} : vector<2x8x96xbf16> to vector<2x8x16xbf16>
    "tpu.trace_start"() <{level = 10 : i32, message = "bqd,bkd->bqk"}> : () -> ()
    %cst_92 = arith.constant dense<0.000000e+00> : vector<2x8x8xf32>
    %206 = tpu.matmul %203, %204, %cst_92 {dimension_numbers = #tpu.dot_dimension_numbers<[2], [2], [1], [1], [0, 0, 0, 1, 1, 1], [0], [0]>} : vector<2x8x16xbf16>, vector<2x8x16xbf16>, vector<2x8x8xf32> -> vector<2x8x8xf32>
    "tpu.trace_stop"() : () -> ()
    %207 = vector.broadcast %24 : vector<2x1x8xf32> to vector<2x8x8xf32>
    %208 = arith.addf %206, %207 : vector<2x8x8xf32>
    %cst_93 = arith.constant dense<0xFF800000> : vector<2x8xf32>
    %209 = vector.multi_reduction <maximumf>, %208, %cst_93 [2] : vector<2x8x8xf32> to vector<2x8xf32>
    %210 = vector.shape_cast %209 : vector<2x8xf32> to vector<2x8x1xf32>
    %211 = vector.broadcast %210 : vector<2x8x1xf32> to vector<2x8x8xf32>
    %212 = arith.subf %208, %211 : vector<2x8x8xf32>
    %213 = math.exp %212 : vector<2x8x8xf32>
    %cst_94 = arith.constant dense<0.000000e+00> : vector<2x8xf32>
    %214 = vector.multi_reduction <add>, %213, %cst_94 [2] : vector<2x8x8xf32> to vector<2x8xf32>
    %215 = vector.shape_cast %214 : vector<2x8xf32> to vector<2x8x1xf32>
    %216 = vector.broadcast %215 : vector<2x8x1xf32> to vector<2x8x8xf32>
    %217 = arith.divf %213, %216 : vector<2x8x8xf32>
    %218 = arith.truncf %217 : vector<2x8x8xf32> to vector<2x8x8xbf16>
    "tpu.trace_start"() <{level = 10 : i32, message = "bqk,bkd->bqd"}> : () -> ()
    %cst_95 = arith.constant dense<0.000000e+00> : vector<2x8x16xf32>
    %219 = tpu.matmul %218, %205, %cst_95 {dimension_numbers = #tpu.dot_dimension_numbers<[2], [1], [1], [2], [0, 0, 0, 1, 1, 2], [0], [0]>} : vector<2x8x8xbf16>, vector<2x8x16xbf16>, vector<2x8x16xf32> -> vector<2x8x16xf32>
    "tpu.trace_stop"() : () -> ()
    %220 = vector.shape_cast %219 : vector<2x8x16xf32> to vector<16x16xf32>
    %221 = arith.truncf %220 : vector<16x16xf32> to vector<16x16xbf16>
    %222 = vector.extract_strided_slice %175 {offsets = [16, 0], sizes = [16, 32], strides = [1, 1]} : vector<32x32xbf16> to vector<16x32xbf16>
    %cst_96 = arith.constant dense<0.000000e+00> : vector<16x32xf32>
    %223 = tpu.matmul %221, %222, %cst_96 {dimension_numbers = #tpu.dot_dimension_numbers<[1], [0], [0], [1], [0, 0, 1, 1], [], []>} : vector<16x16xbf16>, vector<16x32xbf16>, vector<16x32xf32> -> vector<16x32xf32>
    %224 = arith.addf %202, %223 : vector<16x32xf32>
    %c1_97 = arith.constant 1 : index
    %c0_98 = arith.constant 0 : index
    %c0_99 = arith.constant 0 : index
    %225 = vector.load %arg8[%c1_97, %c0_98, %c0_99] : memref<2x1x32xf32, #tpu.memory_space<vmem>>, vector<1x1x32xf32>
    %226 = vector.shape_cast %225 : vector<1x1x32xf32> to vector<1x32xf32>
    %c1_100 = arith.constant 1 : index
    %c0_101 = arith.constant 0 : index
    %c0_102 = arith.constant 0 : index
    %227 = vector.load %arg9[%c1_100, %c0_101, %c0_102] : memref<2x1x32xf32, #tpu.memory_space<vmem>>, vector<1x1x32xf32>
    %228 = vector.shape_cast %227 : vector<1x1x32xf32> to vector<1x32xf32>
    %cst_103 = arith.constant dense<0.000000e+00> : vector<16xf32>
    %229 = vector.multi_reduction <add>, %224, %cst_103 [1] : vector<16x32xf32> to vector<16xf32>
    %230 = vector.shape_cast %229 : vector<16xf32> to vector<16x1xf32>
    %cst_104 = arith.constant 3.200000e+01 : f32
    %231 = vector.broadcast %cst_104 : f32 to vector<16x1xf32>
    %232 = arith.divf %230, %231 : vector<16x1xf32>
    %233 = vector.broadcast %232 : vector<16x1xf32> to vector<16x32xf32>
    %234 = arith.subf %224, %233 : vector<16x32xf32>
    %235 = arith.mulf %234, %234 : vector<16x32xf32>
    %cst_105 = arith.constant dense<0.000000e+00> : vector<16xf32>
    %236 = vector.multi_reduction <add>, %235, %cst_105 [1] : vector<16x32xf32> to vector<16xf32>
    %237 = vector.shape_cast %236 : vector<16xf32> to vector<16x1xf32>
    %cst_106 = arith.constant 3.200000e+01 : f32
    %238 = vector.broadcast %cst_106 : f32 to vector<16x1xf32>
    %239 = arith.divf %237, %238 : vector<16x1xf32>
    %cst_107 = arith.constant 9.99999996E-13 : f32
    %240 = vector.broadcast %cst_107 : f32 to vector<16x1xf32>
    %241 = arith.addf %239, %240 : vector<16x1xf32>
    %242 = math.rsqrt %241 : vector<16x1xf32>
    %243 = vector.broadcast %242 : vector<16x1xf32> to vector<16x32xf32>
    %244 = arith.mulf %234, %243 : vector<16x32xf32>
    %245 = vector.broadcast %226 : vector<1x32xf32> to vector<16x32xf32>
    %246 = arith.mulf %244, %245 : vector<16x32xf32>
    %247 = vector.broadcast %228 : vector<1x32xf32> to vector<16x32xf32>
    %248 = arith.addf %246, %247 : vector<16x32xf32>
    %249 = arith.truncf %248 : vector<16x32xf32> to vector<16x32xbf16>
    %c1_108 = arith.constant 1 : index
    %c0_109 = arith.constant 0 : index
    %c0_110 = arith.constant 0 : index
    %250 = vector.load %arg10[%c1_108, %c0_109, %c0_110] : memref<2x32x128xbf16, #tpu.memory_space<vmem>>, vector<1x32x128xbf16>
    %251 = vector.shape_cast %250 : vector<1x32x128xbf16> to vector<32x128xbf16>
    %cst_111 = arith.constant dense<0.000000e+00> : vector<16x128xf32>
    %252 = tpu.matmul %249, %251, %cst_111 {dimension_numbers = #tpu.dot_dimension_numbers<[1], [0], [0], [1], [0, 0, 1, 1], [], []>} : vector<16x32xbf16>, vector<32x128xbf16>, vector<16x128xf32> -> vector<16x128xf32>
    %c1_112 = arith.constant 1 : index
    %c0_113 = arith.constant 0 : index
    %c0_114 = arith.constant 0 : index
    %253 = vector.load %arg11[%c1_112, %c0_113, %c0_114] : memref<2x1x128xf32, #tpu.memory_space<vmem>>, vector<1x1x128xf32>
    %254 = vector.shape_cast %253 : vector<1x1x128xf32> to vector<1x128xf32>
    %255 = vector.broadcast %254 : vector<1x128xf32> to vector<16x128xf32>
    %256 = arith.addf %252, %255 : vector<16x128xf32>
    %257 = arith.mulf %256, %256 : vector<16x128xf32>
    %258 = arith.mulf %256, %257 : vector<16x128xf32>
    %cst_115 = arith.constant 4.471500e-02 : f32
    %259 = vector.broadcast %cst_115 : f32 to vector<16x128xf32>
    %260 = arith.mulf %259, %258 : vector<16x128xf32>
    %261 = arith.addf %256, %260 : vector<16x128xf32>
    %cst_116 = arith.constant 0.797884583 : f32
    %262 = vector.broadcast %cst_116 : f32 to vector<16x128xf32>
    %263 = arith.mulf %262, %261 : vector<16x128xf32>
    %264 = math.tanh %263 : vector<16x128xf32>
    %cst_117 = arith.constant 1.000000e+00 : f32
    %265 = vector.broadcast %cst_117 : f32 to vector<16x128xf32>
    %266 = arith.addf %265, %264 : vector<16x128xf32>
    %cst_118 = arith.constant 5.000000e-01 : f32
    %267 = vector.broadcast %cst_118 : f32 to vector<16x128xf32>
    %268 = arith.mulf %267, %266 : vector<16x128xf32>
    %269 = arith.mulf %256, %268 : vector<16x128xf32>
    %c1_119 = arith.constant 1 : index
    %c0_120 = arith.constant 0 : index
    %c0_121 = arith.constant 0 : index
    %270 = vector.load %arg12[%c1_119, %c0_120, %c0_121] : memref<2x128x32xbf16, #tpu.memory_space<vmem>>, vector<1x128x32xbf16>
    %271 = vector.shape_cast %270 : vector<1x128x32xbf16> to vector<128x32xbf16>
    %272 = arith.truncf %269 : vector<16x128xf32> to vector<16x128xbf16>
    %cst_122 = arith.constant dense<0.000000e+00> : vector<16x32xf32>
    %273 = tpu.matmul %272, %271, %cst_122 {dimension_numbers = #tpu.dot_dimension_numbers<[1], [0], [0], [1], [0, 0, 1, 1], [], []>} : vector<16x128xbf16>, vector<128x32xbf16>, vector<16x32xf32> -> vector<16x32xf32>
    %c1_123 = arith.constant 1 : index
    %c0_124 = arith.constant 0 : index
    %c0_125 = arith.constant 0 : index
    %274 = vector.load %arg13[%c1_123, %c0_124, %c0_125] : memref<2x1x32xf32, #tpu.memory_space<vmem>>, vector<1x1x32xf32>
    %275 = vector.shape_cast %274 : vector<1x1x32xf32> to vector<1x32xf32>
    %276 = vector.broadcast %275 : vector<1x32xf32> to vector<16x32xf32>
    %277 = arith.addf %273, %276 : vector<16x32xf32>
    %278 = arith.extf %249 : vector<16x32xbf16> to vector<16x32xf32>
    %279 = arith.addf %277, %278 : vector<16x32xf32>
    %c1_126 = arith.constant 1 : index
    %c0_127 = arith.constant 0 : index
    %c0_128 = arith.constant 0 : index
    %280 = vector.load %arg14[%c1_126, %c0_127, %c0_128] : memref<2x1x32xf32, #tpu.memory_space<vmem>>, vector<1x1x32xf32>
    %281 = vector.shape_cast %280 : vector<1x1x32xf32> to vector<1x32xf32>
    %c1_129 = arith.constant 1 : index
    %c0_130 = arith.constant 0 : index
    %c0_131 = arith.constant 0 : index
    %282 = vector.load %arg15[%c1_129, %c0_130, %c0_131] : memref<2x1x32xf32, #tpu.memory_space<vmem>>, vector<1x1x32xf32>
    %283 = vector.shape_cast %282 : vector<1x1x32xf32> to vector<1x32xf32>
    %cst_132 = arith.constant dense<0.000000e+00> : vector<16xf32>
    %284 = vector.multi_reduction <add>, %279, %cst_132 [1] : vector<16x32xf32> to vector<16xf32>
    %285 = vector.shape_cast %284 : vector<16xf32> to vector<16x1xf32>
    %cst_133 = arith.constant 3.200000e+01 : f32
    %286 = vector.broadcast %cst_133 : f32 to vector<16x1xf32>
    %287 = arith.divf %285, %286 : vector<16x1xf32>
    %288 = vector.broadcast %287 : vector<16x1xf32> to vector<16x32xf32>
    %289 = arith.subf %279, %288 : vector<16x32xf32>
    %290 = arith.mulf %289, %289 : vector<16x32xf32>
    %cst_134 = arith.constant dense<0.000000e+00> : vector<16xf32>
    %291 = vector.multi_reduction <add>, %290, %cst_134 [1] : vector<16x32xf32> to vector<16xf32>
    %292 = vector.shape_cast %291 : vector<16xf32> to vector<16x1xf32>
    %cst_135 = arith.constant 3.200000e+01 : f32
    %293 = vector.broadcast %cst_135 : f32 to vector<16x1xf32>
    %294 = arith.divf %292, %293 : vector<16x1xf32>
    %cst_136 = arith.constant 9.99999996E-13 : f32
    %295 = vector.broadcast %cst_136 : f32 to vector<16x1xf32>
    %296 = arith.addf %294, %295 : vector<16x1xf32>
    %297 = math.rsqrt %296 : vector<16x1xf32>
    %298 = vector.broadcast %297 : vector<16x1xf32> to vector<16x32xf32>
    %299 = arith.mulf %289, %298 : vector<16x32xf32>
    %300 = vector.broadcast %281 : vector<1x32xf32> to vector<16x32xf32>
    %301 = arith.mulf %299, %300 : vector<16x32xf32>
    %302 = vector.broadcast %283 : vector<1x32xf32> to vector<16x32xf32>
    %303 = arith.addf %301, %302 : vector<16x32xf32>
    %304 = arith.truncf %303 : vector<16x32xf32> to vector<16x32xbf16>
    %c0_137 = arith.constant 0 : index
    %c0_138 = arith.constant 0 : index
    %305 = vector.load %arg16[%c0_137, %c0_138] : memref<32x32xbf16, #tpu.memory_space<vmem>>, vector<32x32xbf16>
    %cst_139 = arith.constant dense<0.000000e+00> : vector<16x32xf32>
    %306 = tpu.matmul %304, %305, %cst_139 {dimension_numbers = #tpu.dot_dimension_numbers<[1], [0], [0], [1], [0, 0, 1, 1], [], []>} : vector<16x32xbf16>, vector<32x32xbf16>, vector<16x32xf32> -> vector<16x32xf32>
    %c0_140 = arith.constant 0 : index
    %c0_141 = arith.constant 0 : index
    %307 = vector.load %arg17[%c0_140, %c0_141] : memref<1x32xf32, #tpu.memory_space<vmem>>, vector<1x32xf32>
    %308 = vector.broadcast %307 : vector<1x32xf32> to vector<16x32xf32>
    %309 = arith.addf %306, %308 : vector<16x32xf32>
    %310 = math.tanh %309 : vector<16x32xf32>
    %c0_142 = arith.constant 0 : index
    %c0_143 = arith.constant 0 : index
    %311 = vector.load %arg18[%c0_142, %c0_143] : memref<32x128xbf16, #tpu.memory_space<vmem>>, vector<32x128xbf16>
    %312 = arith.truncf %310 : vector<16x32xf32> to vector<16x32xbf16>
    %cst_144 = arith.constant dense<0.000000e+00> : vector<16x128xf32>
    %313 = tpu.matmul %312, %311, %cst_144 {dimension_numbers = #tpu.dot_dimension_numbers<[1], [0], [0], [1], [0, 0, 1, 1], [], []>} : vector<16x32xbf16>, vector<32x128xbf16>, vector<16x128xf32> -> vector<16x128xf32>
    %c0_145 = arith.constant 0 : index
    %c0_146 = arith.constant 0 : index
    %314 = vector.load %arg19[%c0_145, %c0_146] : memref<1x128xf32, #tpu.memory_space<vmem>>, vector<1x128xf32>
    %315 = vector.broadcast %314 : vector<1x128xf32> to vector<16x128xf32>
    %316 = arith.addf %313, %315 : vector<16x128xf32>
    %317 = vector.shape_cast %316 : vector<16x128xf32> to vector<2x8x128xf32>
    %318 = vector.extract_strided_slice %317 {offsets = [0, 0, 0], sizes = [2, 1, 128], strides = [1, 1, 1]} : vector<2x8x128xf32> to vector<2x1x128xf32>
    %319 = vector.shape_cast %318 : vector<2x1x128xf32> to vector<2x128xf32>
    %c0_147 = arith.constant 0 : index
    %c0_148 = arith.constant 0 : index
    %320 = vector.load %arg20[%c0_147, %c0_148] : memref<2x128xf32, #tpu.memory_space<vmem>>, vector<2x128xf32>
    tpu.vector_store %arg20[%c0_147, %c0_148], %319 {strides = array<i32>} : memref<2x128xf32, #tpu.memory_space<vmem>>, vector<2x128xf32>,
    return
  }
}

</mosaic_0001>

<bundles_post_ra>
// kernel: logits_fn.1
= control target key start
LH: loop header
LB: loop body
LE: loop exit
PB: predicated region body
PF: predicated region fallthrough
CT: control target
= control target key end

     0   :  { %s3242_s0 = inlined_call_operand.vmem [shape: f32[16,32], index: 0, kind: input, shape index: {}]   ;;  %s3243_s1 = inlined_call_operand.vmem [shape: f32[2,1,8], index: 1, kind: input, shape index: {}]   ;;  %s3244_s2 = inlined_call_operand.vmem [shape: f32[1,32], index: 2, kind: input, shape index: {}]   ;;  %s3245_s3 = inlined_call_operand.vmem [shape: f32[1,32], index: 3, kind: input, shape index: {}]   ;;  %s3246_s4 = inlined_call_operand.vmem [shape: bf16[2,32,96], index: 4, kind: input, shape index: {}]   ;;  %s3247_s5 = inlined_call_operand.vmem [shape: f32[2,1,96], index: 5, kind: input, shape index: {}]   ;;  %s3248_s6 = inlined_call_operand.vmem [shape: bf16[2,32,32], index: 6, kind: input, shape index: {}]   ;;  %s3249_s7 = inlined_call_operand.vmem [shape: f32[2,1,32], index: 7, kind: input, shape index: {}]   ;;  %s3250_s8 = inlined_call_operand.vmem [shape: f32[2,1,32], index: 8, kind: input, shape index: {}]   ;;  %s3251_s9 = inlined_call_operand.vmem [shape: f32[2,1,32], index: 9, kind: input, shape index: {}]   ;;  %s3252_s10 = inlined_call_operand.vmem [shape: bf16[2,32,128], index: 10, kind: input, shape index: {}]   ;;  %s3253_s11 = inlined_call_operand.vmem [shape: f32[2,1,128], index: 11, kind: input, shape index: {}]   ;;  %s3254_s12 = inlined_call_operand.vmem [shape: bf16[2,128,32], index: 12, kind: input, shape index: {}]   ;;  %s3255_s13 = inlined_call_operand.vmem [shape: f32[2,1,32], index: 13, kind: input, shape index: {}]   ;;  %s3256_s14 = inlined_call_operand.vmem [shape: f32[2,1,32], index: 14, kind: input, shape index: {}]   ;;  %s3257_s15 = inlined_call_operand.vmem [shape: f32[2,1,32], index: 15, kind: input, shape index: {}]   ;;  %s3258_s16 = inlined_call_operand.vmem [shape: bf16[32,32], index: 16, kind: input, shape index: {}]   ;;  %s3259_s17 = inlined_call_operand.vmem [shape: f32[1,32], index: 17, kind: input, shape index: {}]   ;;  %s3260_s18 = inlined_call_operand.vmem [shape: bf16[32,128], index: 18, kind: input, shape index: {}]   ;;  %s3261_s19 = inlined_call_operand.vmem [shape: f32[1,128], index: 19, kind: input, shape index: {}]   ;;  %s3262_s20 = inlined_call_operand.hbm [shape: f32[2,128], index: 20, kind: output, shape index: {}]  }
   0x1   :  { %3266 = sst [smem:[#allocation5_spill]] %s3242_s0 }
   0x2   :  { %3267 = sst [smem:[#allocation6_spill]] %s3243_s1 }
   0x3   :  { %3268 = sst [smem:[#allocation7_spill]] %s3244_s2 }
   0x4   :  { %3269 = sst [smem:[#allocation8_spill]] %s3245_s3 }
   0x5   :  { %3270 = sst [smem:[#allocation9_spill]] %s3246_s4 }
   0x6   :  { %s3271_s23 = sld [smem:[#allocation5_spill]]  ;;  %vm71_vm0 = vcmask 261120  }
   0xc   :  { %v67_v0 = vld [vmem:[%s3271_s23] sm:$0xff]  ;;  %v68_v1 = vld [vmem:[%s3271_s23 + $0x8] sm:$0xff] }
   0xd   :  { %v72_v2 = vsel %vm71_vm0, %v67_v0, 0.0  ;;  %v75_v3 = vsel %vm71_vm0, %v68_v1, 0.0 }
   0xe   :  { %73 = vadd.xlane.f32.xlu0 %v72_v2 }
  0x12   :  { %76 = vadd.xlane.f32.xlu0 %v75_v3 }
  0x13   :  { %25 = vsyncpa [#allocation3], 0  ;;  %s3272_s26 = sld [smem:[#allocation9_spill]]  ;;  %v2683_v15 = vmov 0.0   ;;  %vm2684_vm1 = vmmov 0   ;;  %s3273_s30 = sld [smem:[#allocation7_spill]] }
  0x14   :  { %2335 = vmatprep.subr.bf16.mxu1 %v2683_v15  ;;  %2349 = vmatprep.subr.bf16.mxu0 %v2683_v15  ;;  %s3274_s1 = sld [smem:[#allocation8_spill]]  ;;  %v2145_v34 = vld [vmem:[%s3247_s5] ss:$0 sm:$0xff]  ;;  %s2685_s24 = smov 96   ;;  %vm217_vm2 = vcmask 130048   ;;  %vm313_vm3 = vcmask 64512  }
  0x15   :  { %2339 = vmatprep.mubr.msk.bf16.mxu1 %vm2684_vm1, %v2683_v15  ;;  %2351 = vmatprep.mubr.msk.bf16.mxu0 %vm2684_vm1, %v2683_v15  ;;  %s3275_s3 = sld [smem:[#allocation6_spill]]  ;;  %s2686_s4 = smov 64   ;;  %vm343_vm4 = vcmask 1043456   ;;  %vm2125_vm5 = vcmask 1041409  }
  0x16   :  { %s2687_s29 = smov 80  }
  0x19   :  { %v2563_v14 = vld [vmem:[%s3272_s26] sm:$0xff]   ;;  %v2564_v16 = vld [vmem:[%s3272_s26 + $0x8] sm:$0xff]  }
  0x1a   :  { %2336 = vmatpush3.bf16.msra.mxu1 %v2563_v14  ;;  %v2143_v25 = vld [vmem:[%s3273_s30] ss:$0 sm:$0xff]  ;;  %s2688_s30 = smov 112  }
  0x1b   :  { %2337 = vmatprep.subr.bf16.mxu1 %v2683_v15  ;;  %v2144_v29 = vld [vmem:[%s3274_s1] ss:$0 sm:$0xff]  ;;  %v2863_v49 = vld [vmem:[%s3275_s3 + $0x1] ss:$0 sm:$0xff]  ;;  %s2689_s1 = smov 48  }
  0x1c   :  { %v2858_v47 = vld [vmem:[%s3275_s3] ss:$0 sm:$0xff] }
  0x1e   :  { %2338 = vmatpush3.bf16.msra.mxu1 %v2564_v16 }
  0x1f   :  { %2343 = vmatprep.subr.bf16.mxu1 %v2683_v15 }
  0x9b   :  { %v74_v4 = vpop.xlane.xlu0 %73 }
  0x9c   :  { %v79_v5 = vmul.f32 0.03125, %v74_v4 }
  0x9e   :  { %v81_v6 = vsub.f32 %v67_v0, %v79_v5 }
  0x9f   :  { %v77_v7 = vpop.xlane.xlu0 %76 }
  0xa0   :  { %v80_v8 = vmul.f32 0.03125, %v77_v7  ;;  %v83_v9 = vmul.f32 %v81_v6, %v81_v6 }
  0xa2   :  { %v82_v10 = vsub.f32 %v68_v1, %v80_v8  ;;  %v85_v11 = vsel %vm71_vm0, %v83_v9, 0.0 }
  0xa3   :  { %86 = vadd.xlane.f32.xlu1 %v85_v11 }
  0xa4   :  { %v84_v12 = vmul.f32 %v82_v10, %v82_v10 }
  0xa6   :  { %v88_v13 = vsel %vm71_vm0, %v84_v12, 0.0 }
  0xa7   :  { %89 = vadd.xlane.f32.xlu1 %v88_v13 }
 0x130   :  { %v87_v17 = vpop.xlane.xlu1 %86 }
 0x131   :  { %v91_v18 = vmul.f32 0.03125, %v87_v17  ;;  %v2565_v17 = vld [vmem:[%s3248_s6] sm:$0xff]  }
 0x133   :  { %v93_v19 = vadd.f32 1e-12, %v91_v18 }
 0x134   :  { %v90_v20 = vpop.xlane.xlu1 %89 }
 0x135   :  { %2595 = vrsqrt.f32 %v93_v19  ;;  %v92_v21 = vmul.f32 0.03125, %v90_v20 }
 0x137   :  { %v94_v22 = vadd.f32 1e-12, %v92_v21 }
 0x139   :  { %2597 = vrsqrt.f32 %v94_v22 }
 0x13f   :  { %v2596_v23 = vpop.eup %2595 }
 0x140   :  { %v97_v24 = vmul.f32 %v2596_v23, %v81_v6 }
 0x142   :  { %v105_v28 = vmul.f32 %v2143_v25, %v97_v24 }
 0x143   :  { %v2598_v26 = vpop.eup %2597 }
 0x144   :  { %v98_v27 = vmul.f32 %v2598_v26, %v82_v10  ;;  %v113_v31 = vadd.f32 %v2144_v29, %v105_v28 }
 0x146   :  { %v106_v30 = vmul.f32 %v2143_v25, %v98_v27 }
 0x148   :  { %v114_v32 = vadd.f32 %v2144_v29, %v106_v30 }
 0x14a   :  { %v2826_v33 = vpack.c.bf16 %v114_v32, %v113_v31 }
 0x14c   :  { %2340 = vmatmul.mubr.msk.bf16.vlgmr.msra.gmra.mrb[0].mxu1 %vm71_vm0, %v2826_v33 }
 0x14d   :  { %2345 = vmatprep.mubr.msk.bf16.mxu1 %vm2684_vm1, %v2683_v15 }
 0x21f   :  { %v178_v35 = vpop.f32.mrb[0].mxu1 }
 0x220   :  { %v179_v36 = vadd.f32 %v2145_v34, %v178_v35  ;;  %v2341_v37 = vpop.f32.mrb[1].mxu1 }
 0x221   :  { %v181_v38 = vpop.f32.mrb[2].mxu1 }
 0x222   :  { %v2835_v39 = vpack.c.bf16 %v179_v36, %v179_v36  ;;  %v182_v40 = vadd.f32 %v2145_v34, %v181_v38  ;;  %v2342_v41 = vpop.f32.mrb[3].mxu1 }
 0x224   :  { %v2837_v42 = vpack.c.bf16 %v182_v40, %v182_v40  ;;  %215 = vrot.lane.b32.xlu0 %v2835_v39, %s2685_s24 }
 0x226   :  { %265 = vrot.lane.b32.xlu1 %v2837_v42, %s2685_s24 }
 0x296   :  { %v216_v43 = vpop.permute.xlu0 %215 }
 0x297   :  { %v222_v44 = vsel %vm217_vm2, %v216_v43, 0 }
 0x298   :  { %2344 = vmatpush3.bf16.xpose.msra.mxu1 %v222_v44  ;;  %v266_v45 = vpop.permute.xlu1 %265 }
 0x299   :  { %v271_v46 = vsel %vm217_vm2, %v266_v45, 0  ;;  %2355 = vmatprep.subr.bf16.mxu1 %v2683_v15 }
 0x29a   :  { %2350 = vmatpush3.bf16.xpose.msra.mxu0 %v271_v46 }
 0x29b   :  { %2361 = vmatprep.subr.bf16.mxu0 %v2683_v15 }
 0x29f   :  { %2346 = vmatmul.mubr.msk.bf16.vlgmr.msra.gmra.mrb[4].mxu1 %vm217_vm2, %v2835_v39 }
 0x2a0   :  { %2357 = vmatprep.mubr.msk.bf16.mxu1 %vm2684_vm1, %v2683_v15 }
 0x2a1   :  { %2352 = vmatmul.mubr.msk.bf16.vlgmr.msra.gmra.mrb[0].mxu0 %vm217_vm2, %v2837_v42 }
 0x2a2   :  { %2363 = vmatprep.mubr.msk.bf16.mxu0 %vm2684_vm1, %v2683_v15 }
 0x372   :  { %v258_v48 = vpop.f32.mrb[4].mxu1 }
 0x373   :  { %v259_v50 = vadd.f32 %v2858_v47, %v258_v48  ;;  %v2347_v51 = vpop.f32.mrb[5].mxu1 }
 0x374   :  { %v261_v52 = vpop.f32.mrb[6].mxu1  ;;  %v307_v53 = vpop.f32.mrb[0].mxu0 }
 0x375   :  { %v308_v54 = vadd.f32 %v2863_v49, %v307_v53  ;;  %v2348_v55 = vpop.f32.mrb[7].mxu1  ;;  %v2353_v56 = vpop.f32.mrb[1].mxu0  ;;  %v314_v57 = vsel %vm313_vm3, %v259_v50, -inf }
 0x376   :  { %v310_v58 = vpop.f32.mrb[2].mxu0  ;;  %315 = vmax.xlane.f32.xlu1 %v314_v57 }
 0x377   :  { %v2354_v59 = vpop.f32.mrb[3].mxu0  ;;  %v317_v60 = vsel %vm313_vm3, %v308_v54, -inf }
 0x378   :  { %318 = vmax.xlane.f32.xlu0 %v317_v60 }
 0x403   :  { %v316_v61 = vpop.xlane.xlu1 %315 }
 0x404   :  { %v320_v62 = vsub.f32 %v259_v50, %v316_v61 }
 0x405   :  { %v319_v63 = vpop.xlane.xlu0 %318 }
 0x406   :  { %v322_v0 = vmul.f32 1.442695, %v320_v62  ;;  %v321_v1 = vsub.f32 %v308_v54, %v319_v63 }
 0x408   :  { %2599 = vpow2.f32 %v322_v0  ;;  %v324_v2 = vmul.f32 1.442695, %v321_v1 }
 0x40a   :  { %2601 = vpow2.f32 %v324_v2 }
 0x412   :  { %v2600_v3 = vpop.eup %2599 }
 0x413   :  { %v326_v4 = vsel %vm313_vm3, %v2600_v3, 0.0 }
 0x414   :  { %v2602_v5 = vpop.eup %2601  ;;  %327 = vadd.xlane.f32.xlu0 %v326_v4 }
 0x415   :  { %v329_v6 = vsel %vm313_vm3, %v2602_v5, 0.0 }
 0x416   :  { %330 = vadd.xlane.f32.xlu1 %v329_v6 }
 0x427   :  { %387 = vrot.lane.b32.xlu1 %v2837_v42, %s2686_s4 }
 0x42a   :  { %338 = vrot.lane.b32.xlu0 %v2835_v39, %s2686_s4 }
 0x42b   :  { %490 = vrot.lane.b32.xlu1 %v2835_v39, %s2687_s29 }
 0x42e   :  { %488 = vrot.lane.b32.xlu0 %v2835_v39, %s2688_s30 }
 0x42f   :  { %540 = vrot.lane.b32.xlu1 %v2837_v42, %s2687_s29 }
 0x433   :  { %538 = vrot.lane.b32.xlu1 %v2837_v42, %s2688_s30 }
 0x4a1   :  { %v328_v7 = vpop.xlane.xlu0 %327 }
 0x4a2   :  { %2603 = vrcp.f32 %v328_v7 }
 0x4a3   :  { %v331_v8 = vpop.xlane.xlu1 %330 }
 0x4a4   :  { %2605 = vrcp.f32 %v331_v8 }
 0x4a5   :  { %v339_v9 = vpop.permute.xlu0 %338 }
 0x4a6   :  { %v345_v10 = vsel %vm343_vm4, %v339_v9, 0  ;;  %v2566_v9 = vld [vmem:[%s3248_s6 + $0x8] sm:$0xff]  }
 0x4a7   :  { %2356 = vmatpush3.bf16.msra.mxu1 %v345_v10  ;;  %v388_v11 = vpop.permute.xlu1 %387 }
 0x4a8   :  { %v393_v12 = vsel %vm343_vm4, %v388_v11, 0  ;;  %2367 = vmatprep.subr.bf16.mxu1 %v2683_v15 }
 0x4a9   :  { %2362 = vmatpush3.bf16.msra.mxu0 %v393_v12  ;;  %v489_v23 = vpop.permute.xlu0 %488 }
 0x4aa   :  { %2373 = vmatprep.subr.bf16.mxu0 %v2683_v15 }
 0x4ab   :  { %v491_v20 = vpop.permute.xlu1 %490 }
 0x4ac   :  { %v2604_v13 = vpop.eup %2603  ;;  %v496_v22 = vsel %vm217_vm2, %v491_v20, 0  ;;  %v191_v20 = vunpack.c.l.bf16 %v2826_v33 }
 0x4ad   :  { %v333_v14 = vmul.f32 %v2604_v13, %v2600_v3 }
 0x4ae   :  { %v2606_v16 = vpop.eup %2605 }
 0x4af   :  { %v335_v18 = vmul.f32 %v2606_v16, %v2602_v5  ;;  %v336_v19 = vpack.c.bf16 %v333_v14, %v333_v14  ;;  %v541_v25 = vpop.permute.xlu1 %540 }
 0x4b0   :  { %v546_v34 = vsel %vm217_vm2, %v541_v25, 0 }
 0x4b1   :  { %2358 = vmatmul.mubr.msk.bf16.vlgmr.msra.gmra.mrb[8].mxu1 %vm313_vm3, %v336_v19  ;;  %v337_v21 = vpack.c.bf16 %v335_v18, %v335_v18 }
 0x4b2   :  { %2368 = vmatpush3.bf16.msra.mxu1 %v2565_v17  ;;  %2369 = vmatprep.mubr.msk.bf16.mxu1 %vm2684_vm1, %v2683_v15 }
 0x4b3   :  { %2364 = vmatmul.mubr.msk.bf16.vlgmr.msra.gmra.mrb[4].mxu0 %vm313_vm3, %v337_v21  ;;  %2379 = vmatprep.subr.bf16.mxu1 %v2683_v15  ;;  %v539_v40 = vpop.permute.xlu1 %538  ;;  %v2149_v21 = vld [vmem:[%s3249_s7] ss:$0 sm:$0xff] }
 0x4b4   :  { %2374 = vmatpush3.bf16.xpose.msra.mxu0 %v496_v22  ;;  %2375 = vmatprep.mubr.msk.bf16.mxu0 %vm2684_vm1, %v2683_v15  ;;  %v192_v22 = vunpack.c.h.bf16 %v2826_v33 }
 0x4b5   :  { %2385 = vmatprep.subr.bf16.mxu0 %v2683_v15 }
 0x4bb   :  { %2376 = vmatmul.mubr.msk.bf16.vlgmr.msra.gmra.mrb[8].mxu0 %vm217_vm2, %v489_v23  ;;  %v200_v23 = vadd.f32 %v2149_v21, %v191_v20 }
 0x4bc   :  { %2387 = vmatprep.mubr.msk.bf16.mxu0 %vm2684_vm1, %v2683_v15 }
 0x584   :  { %v381_v24 = vpop.f32.mrb[8].mxu1 }
 0x585   :  { %v2359_v26 = vpop.f32.mrb[9].mxu1 }
 0x586   :  { %v384_v27 = vpop.f32.mrb[10].mxu1  ;;  %v429_v28 = vpop.f32.mrb[4].mxu0 }
 0x587   :  { %v435_v29 = vpack.c.bf16 %v429_v28, %v381_v24  ;;  %v2360_v30 = vpop.f32.mrb[11].mxu1  ;;  %v2365_v31 = vpop.f32.mrb[5].mxu0  ;;  %v201_v27 = vadd.f32 %v2149_v21, %v192_v22 }
 0x588   :  { %v432_v32 = vpop.f32.mrb[6].mxu0 }
 0x589   :  { %v2366_v35 = vpop.f32.mrb[7].mxu0  ;;  %2370 = vmatmul.mubr.msk.bf16.vlgmr.msra.gmra.mrb[12].mxu1 %vm217_vm2, %v435_v29 }
 0x58a   :  { %2380 = vmatpush3.bf16.xpose.msra.mxu1 %v546_v34  ;;  %2381 = vmatprep.mubr.msk.bf16.mxu1 %vm2684_vm1, %v2683_v15 }
 0x58b   :  { %2391 = vmatprep.subr.bf16.mxu1 %v2683_v15 }
 0x58e   :  { %v532_v36 = vpop.f32.mrb[8].mxu0 }
 0x58f   :  { %v533_v37 = vadd.f32 %v2858_v47, %v532_v36  ;;  %v2377_v38 = vpop.f32.mrb[9].mxu0 }
 0x590   :  { %v535_v41 = vpop.f32.mrb[10].mxu0 }
 0x591   :  { %v2378_v43 = vpop.f32.mrb[11].mxu0  ;;  %2382 = vmatmul.mubr.msk.bf16.vlgmr.msra.gmra.mrb[16].mxu1 %vm217_vm2, %v539_v40  ;;  %v588_v44 = vsel %vm313_vm3, %v533_v37, -inf }
 0x592   :  { %589 = vmax.xlane.f32.xlu0 %v588_v44  ;;  %2393 = vmatprep.mubr.msk.bf16.mxu1 %vm2684_vm1, %v2683_v15 }
 0x61f   :  { %v590_v45 = vpop.xlane.xlu0 %589 }
 0x620   :  { %v594_v46 = vsub.f32 %v533_v37, %v590_v45  ;;  %v2567_v45 = vld [vmem:[%s3252_s10] sm:$0xff]  }
 0x622   :  { %v596_v48 = vmul.f32 1.442695, %v594_v46  ;;  %v2568_v46 = vld [vmem:[%s3252_s10 + $0x8] sm:$0xff]  }
 0x624   :  { %2607 = vpow2.f32 %v596_v48 }
 0x62e   :  { %v2608_v50 = vpop.eup %2607 }
 0x62f   :  { %v600_v51 = vsel %vm313_vm3, %v2608_v50, 0.0 }
 0x630   :  { %601 = vadd.xlane.f32.xlu0 %v600_v51 }
 0x664   :  { %v582_v52 = vpop.f32.mrb[16].mxu1 }
 0x665   :  { %v583_v53 = vadd.f32 %v2863_v49, %v582_v52  ;;  %v2383_v54 = vpop.f32.mrb[17].mxu1 }
 0x666   :  { %v585_v55 = vpop.f32.mrb[18].mxu1 }
 0x667   :  { %v2384_v56 = vpop.f32.mrb[19].mxu1  ;;  %v591_v57 = vsel %vm313_vm3, %v583_v53, -inf }
 0x668   :  { %592 = vmax.xlane.f32.xlu1 %v591_v57  ;;  %v2164_v56 = vld [vmem:[%s3250_s8] ss:$0 sm:$0xff] }
 0x679   :  { %660 = vrot.lane.b32.xlu1 %v2837_v42, %s2689_s1 }
 0x6bd   :  { %v602_v1 = vpop.xlane.xlu0 %601 }
 0x6f5   :  { %v593_v58 = vpop.xlane.xlu1 %592 }
 0x6f6   :  { %v595_v59 = vsub.f32 %v583_v53, %v593_v58 }
 0x6f8   :  { %v598_v60 = vmul.f32 1.442695, %v595_v59 }
 0x6f9   :  { %v661_v61 = vpop.permute.xlu1 %660 }
 0x6fa   :  { %2609 = vpow2.f32 %v598_v60  ;;  %v666_v62 = vsel %vm343_vm4, %v661_v61, 0  ;;  %v2165_v61 = vld [vmem:[%s3251_s9] ss:$0 sm:$0xff] }
 0x6fb   :  { %2392 = vmatpush3.bf16.msra.mxu1 %v666_v62  ;;  %2611 = vrcp.f32 %v602_v1 }
 0x6fc   :  { %2397 = vmatprep.subr.bf16.mxu1 %v2683_v15 }
 0x704   :  { %v2610_v63 = vpop.eup %2609 }
 0x705   :  { %v603_v0 = vsel %vm313_vm3, %v2610_v63, 0.0  ;;  %v2612_v42 = vpop.eup %2611 }
 0x706   :  { %604 = vadd.xlane.f32.xlu0 %v603_v0  ;;  %v607_v3 = vmul.f32 %v2612_v42, %v2608_v50  ;;  %v2569_v42 = vld [vmem:[%s3254_s12] sm:$0xff]  }
 0x708   :  { %v610_v6 = vpack.c.bf16 %v607_v3, %v607_v3  ;;  %v2571_v3 = vld [vmem:[%s3254_s12 + $0x10] sm:$0xff]  }
 0x71c   :  { %612 = vrot.lane.b32.xlu0 %v2835_v39, %s2689_s1 }
 0x793   :  { %v605_v2 = vpop.xlane.xlu0 %604 }
 0x794   :  { %2613 = vrcp.f32 %v605_v2  ;;  %v2570_v2 = vld [vmem:[%s3254_s12 + $0x8] sm:$0xff]  }
 0x797   :  { %v613_v4 = vpop.permute.xlu0 %612 }
 0x798   :  { %v618_v5 = vsel %vm343_vm4, %v613_v4, 0  ;;  %v2572_v4 = vld [vmem:[%s3254_s12 + $0x18] sm:$0xff]  }
 0x799   :  { %2386 = vmatpush3.bf16.msra.mxu0 %v618_v5  ;;  %v2573_v5 = vld [vmem:[%s3254_s12 + $0x20] sm:$0xff]  }
 0x79a   :  { %2403 = vmatprep.subr.bf16.mxu0 %v2683_v15 }
 0x79c   :  { %2388 = vmatmul.mubr.msk.bf16.vlgmr.msra.gmra.mrb[12].mxu0 %vm313_vm3, %v610_v6  ;;  %v2574_v6 = vld [vmem:[%s3254_s12 + $0x28] sm:$0xff]  }
 0x79d   :  { %2407 = vmatprep.mubr.msk.bf16.mxu0 %vm2684_vm1, %v2683_v15  ;;  %2404 = vmatpush3.bf16.msra.mxu0 %v2567_v45 }
 0x79e   :  { %v2614_v7 = vpop.eup %2613  ;;  %2405 = vmatprep.subr.bf16.mxu0 %v2683_v15 }
 0x79f   :  { %v609_v39 = vmul.f32 %v2614_v7, %v2610_v63  ;;  %v2575_v7 = vld [vmem:[%s3254_s12 + $0x30] sm:$0xff]  }
 0x7a1   :  { %v611_v8 = vpack.c.bf16 %v609_v39, %v609_v39  ;;  %2406 = vmatpush3.bf16.msra.mxu0 %v2568_v46  ;;  %v2576_v39 = vld [vmem:[%s3254_s12 + $0x38] sm:$0xff]  }
 0x7a2   :  { %2411 = vmatprep.subr.bf16.mxu0 %v2683_v15 }
 0x7a3   :  { %2394 = vmatmul.mubr.msk.bf16.vlgmr.msra.gmra.mrb[20].mxu1 %vm313_vm3, %v611_v8  ;;  %v2166_v8 = vld [vmem:[%s3253_s11] ss:$0 sm:$0xff] }
 0x7a4   :  { %2399 = vmatprep.mubr.msk.bf16.mxu1 %vm2684_vm1, %v2683_v15  ;;  %2398 = vmatpush3.bf16.msra.mxu1 %v2566_v9 }
 0x7a5   :  { %2431 = vmatprep.subr.bf16.mxu1 %v2683_v15 }
 0x86f   :  { %v654_v10 = vpop.f32.mrb[12].mxu0 }
 0x870   :  { %v2389_v11 = vpop.f32.mrb[13].mxu0 }
 0x871   :  { %v657_v12 = vpop.f32.mrb[14].mxu0 }
 0x872   :  { %v2390_v13 = vpop.f32.mrb[15].mxu0 }
 0x876   :  { %v702_v14 = vpop.f32.mrb[20].mxu1 }
 0x877   :  { %v708_v16 = vpack.c.bf16 %v702_v14, %v654_v10  ;;  %v2395_v17 = vpop.f32.mrb[21].mxu1 }
 0x878   :  { %v705_v18 = vpop.f32.mrb[22].mxu1 }
 0x879   :  { %v2396_v19 = vpop.f32.mrb[23].mxu1  ;;  %2400 = vmatmul.mubr.msk.bf16.vlgmr.msra.gmra.mrb[12].mxu1 %vm217_vm2, %v708_v16 }
 0x87a   :  { %2435 = vmatprep.mubr.msk.bf16.mxu1 %vm2684_vm1, %v2683_v15 }
 0x94c   :  { %v752_v24 = vpop.f32.mrb[12].mxu1 }
 0x94d   :  { %v2543_v25 = vadd.f32 %v752_v24, %v200_v23  ;;  %v2401_v26 = vpop.f32.mrb[13].mxu1 }
 0x94e   :  { %v755_v28 = vpop.f32.mrb[14].mxu1 }
 0x94f   :  { %v2544_v29 = vadd.f32 %v755_v28, %v201_v27  ;;  %v2402_v30 = vpop.f32.mrb[15].mxu1  ;;  %v763_v31 = vsel %vm71_vm0, %v2543_v25, 0.0 }
 0x950   :  { %764 = vadd.xlane.f32.xlu1 %v763_v31 }
 0x951   :  { %v766_v32 = vsel %vm71_vm0, %v2544_v29, 0.0 }
 0x952   :  { %767 = vadd.xlane.f32.xlu0 %v766_v32 }
 0x9dd   :  { %v765_v34 = vpop.xlane.xlu1 %764 }
 0x9de   :  { %v769_v35 = vmul.f32 0.03125, %v765_v34 }
 0x9df   :  { %v768_v36 = vpop.xlane.xlu0 %767 }
 0x9e0   :  { %v771_v37 = vsub.f32 %v2543_v25, %v769_v35  ;;  %v770_v38 = vmul.f32 0.03125, %v768_v36  ;;  %v2170_v36 = vld [vmem:[%s3255_s13] ss:$0 sm:$0xff] }
 0x9e2   :  { %v772_v33 = vsub.f32 %v2544_v29, %v770_v38  ;;  %v773_v40 = vmul.f32 %v771_v37, %v771_v37 }
 0x9e4   :  { %v775_v41 = vsel %vm71_vm0, %v773_v40, 0.0  ;;  %v774_v43 = vmul.f32 %v772_v33, %v772_v33 }
 0x9e5   :  { %776 = vadd.xlane.f32.xlu0 %v775_v41 }
 0x9e6   :  { %v778_v44 = vsel %vm71_vm0, %v774_v43, 0.0 }
 0x9e7   :  { %779 = vadd.xlane.f32.xlu1 %v778_v44 }
 0xa72   :  { %v777_v48 = vpop.xlane.xlu0 %776 }
 0xa73   :  { %v781_v50 = vmul.f32 0.03125, %v777_v48 }
 0xa74   :  { %v780_v51 = vpop.xlane.xlu1 %779 }
 0xa75   :  { %v783_v52 = vadd.f32 1e-12, %v781_v50  ;;  %v782_v53 = vmul.f32 0.03125, %v780_v51 }
 0xa77   :  { %2615 = vrsqrt.f32 %v783_v52  ;;  %v784_v54 = vadd.f32 1e-12, %v782_v53 }
 0xa79   :  { %2617 = vrsqrt.f32 %v784_v54 }
 0xa81   :  { %v2616_v55 = vpop.eup %2615 }
 0xa82   :  { %v787_v57 = vmul.f32 %v2616_v55, %v771_v37 }
 0xa83   :  { %v2618_v58 = vpop.eup %2617 }
 0xa84   :  { %v795_v59 = vmul.f32 %v2164_v56, %v787_v57  ;;  %v788_v60 = vmul.f32 %v2618_v58, %v772_v33 }
 0xa86   :  { %v796_v62 = vmul.f32 %v2164_v56, %v788_v60  ;;  %v803_v63 = vadd.f32 %v2165_v61, %v795_v59 }
 0xa88   :  { %v804_v0 = vadd.f32 %v2165_v61, %v796_v62  ;;  %v2577_v62 = vld [vmem:[%s3272_s26 + $0x10] sm:$0xff]  }
 0xa89   :  { %2432 = vmatpush3.bf16.msra.mxu1 %v2577_v62 }
 0xa8a   :  { %v2960_v1 = vpack.c.bf16 %v804_v0, %v803_v63  ;;  %v2578_v63 = vld [vmem:[%s3272_s26 + $0x18] sm:$0xff]   ;;  %2433 = vmatprep.subr.bf16.mxu1 %v2683_v15 }
 0xa8c   :  { %2408 = vmatmul.mubr.msk.bf16.vlgmr.msra.gmra.mrb[16].mxu0 %vm71_vm0, %v2960_v1  ;;  %v1004_v40 = vunpack.c.l.bf16 %v2960_v1  ;;  %v1005_v46 = vunpack.c.h.bf16 %v2960_v1 }
 0xa8d   :  { %2427 = vmatprep.mubr.msk.bf16.mxu0 %vm2684_vm1, %v2683_v15  ;;  %2412 = vmatpush3.bf16.msra.mxu0 %v2569_v42 }
 0xa8e   :  { %2413 = vmatprep.subr.bf16.mxu0 %v2683_v15  ;;  %2434 = vmatpush3.bf16.msra.mxu1 %v2578_v63 }
 0xa8f   :  { %2439 = vmatprep.subr.bf16.mxu1 %v2683_v15 }
 0xa91   :  { %2414 = vmatpush3.bf16.msra.mxu0 %v2570_v2 }
 0xa92   :  { %2415 = vmatprep.subr.bf16.mxu0 %v2683_v15 }
 0xa95   :  { %2416 = vmatpush3.bf16.msra.mxu0 %v2571_v3 }
 0xa96   :  { %2417 = vmatprep.subr.bf16.mxu0 %v2683_v15 }
 0xa99   :  { %2418 = vmatpush3.bf16.msra.mxu0 %v2572_v4 }
 0xa9a   :  { %2419 = vmatprep.subr.bf16.mxu0 %v2683_v15 }
 0xa9d   :  { %2420 = vmatpush3.bf16.msra.mxu0 %v2573_v5 }
 0xa9e   :  { %2421 = vmatprep.subr.bf16.mxu0 %v2683_v15 }
 0xaa1   :  { %2422 = vmatpush3.bf16.msra.mxu0 %v2574_v6  ;;  %v2179_v6 = vld [vmem:[%s3256_s14] ss:$0 sm:$0xff] }
 0xaa2   :  { %2423 = vmatprep.subr.bf16.mxu0 %v2683_v15 }
 0xaa5   :  { %2424 = vmatpush3.bf16.msra.mxu0 %v2575_v7 }
 0xaa6   :  { %2425 = vmatprep.subr.bf16.mxu0 %v2683_v15 }
 0xaa9   :  { %2426 = vmatpush3.bf16.msra.mxu0 %v2576_v39 }
 0xaaa   :  { %2457 = vmatprep.subr.bf16.mxu0 %v2683_v15 }
 0xb5f   :  { %v866_v9 = vpop.f32.mrb[16].mxu0 }
 0xb60   :  { %v867_v10 = vadd.f32 %v2166_v8, %v866_v9  ;;  %v2409_v11 = vpop.f32.mrb[17].mxu0 }
 0xb61   :  { %v869_v12 = vpop.f32.mrb[18].mxu0 }
 0xb62   :  { %v873_v13 = vmul.f32 %v867_v10, %v867_v10  ;;  %v870_v14 = vadd.f32 %v2166_v8, %v869_v12  ;;  %v2410_v16 = vpop.f32.mrb[19].mxu0 }
 0xb63   :  { %v2186_v16 = vld [vmem:[%s3247_s5 + $0x1] ss:$0 sm:$0xff] }
 0xb64   :  { %v875_v17 = vmul.f32 %v873_v13, %v867_v10  ;;  %v874_v18 = vmul.f32 %v870_v14, %v870_v14 }
 0xb66   :  { %v877_v19 = vmul.f32 0.044715, %v875_v17  ;;  %v876_v20 = vmul.f32 %v874_v18, %v870_v14 }
 0xb68   :  { %v879_v21 = vadd.f32 %v877_v19, %v867_v10  ;;  %v878_v22 = vmul.f32 0.044715, %v876_v20 }
 0xb6a   :  { %v881_v23 = vmul.f32 0.7978846, %v879_v21  ;;  %v880_v24 = vadd.f32 %v878_v22, %v870_v14 }
 0xb6c   :  { %2619 = vtanh.f32 %v881_v23  ;;  %v882_v25 = vmul.f32 0.7978846, %v880_v24 }
 0xb6e   :  { %2621 = vtanh.f32 %v882_v25 }
 0xb76   :  { %v2620_v26 = vpop.eup %2619 }
 0xb77   :  { %v885_v27 = vadd.f32 1.0, %v2620_v26 }
 0xb78   :  { %v2622_v28 = vpop.eup %2621 }
 0xb79   :  { %v887_v29 = vmul.f32 0.5, %v885_v27  ;;  %v886_v30 = vadd.f32 1.0, %v2622_v28 }
 0xb7b   :  { %v888_v31 = vmul.f32 0.5, %v886_v30  ;;  %v889_v32 = vmul.f32 %v887_v29, %v867_v10  ;;  %v2180_v10 = vld [vmem:[%s3257_s15] ss:$0 sm:$0xff] }
 0xb7d   :  { %v890_v34 = vmul.f32 %v888_v31, %v870_v14 }
 0xb7f   :  { %v907_v35 = vpack.c.bf16 %v890_v34, %v889_v32 }
 0xb81   :  { %2428 = vmatmul.mubr.bf16.vlgmr.msra.gmra.mrb[20].mxu0 %v907_v35 }
 0xb82   :  { %2459 = vmatprep.mubr.msk.bf16.mxu0 %vm2684_vm1, %v2683_v15 }
 0xc54   :  { %v997_v37 = vpop.f32.mrb[20].mxu0 }
 0xc55   :  { %v998_v38 = vadd.f32 %v2170_v36, %v997_v37  ;;  %v2429_v33 = vpop.f32.mrb[21].mxu0 }
 0xc56   :  { %v1000_v41 = vpop.f32.mrb[22].mxu0 }
 0xc57   :  { %v1001_v43 = vadd.f32 %v2170_v36, %v1000_v41  ;;  %v2430_v44 = vpop.f32.mrb[23].mxu0  ;;  %v1006_v45 = vadd.f32 %v1004_v40, %v998_v38 }
 0xc59   :  { %v1010_v48 = vsel %vm71_vm0, %v1006_v45, 0.0  ;;  %v1007_v50 = vadd.f32 %v1005_v46, %v1001_v43 }
 0xc5a   :  { %1011 = vadd.xlane.f32.xlu0 %v1010_v48 }
 0xc5b   :  { %v1013_v51 = vsel %vm71_vm0, %v1007_v50, 0.0 }
 0xc5c   :  { %1014 = vadd.xlane.f32.xlu1 %v1013_v51 }
 0xce7   :  { %v1012_v52 = vpop.xlane.xlu0 %1011 }
 0xce8   :  { %v1016_v53 = vmul.f32 0.03125, %v1012_v52 }
 0xce9   :  { %v1015_v54 = vpop.xlane.xlu1 %1014 }
 0xcea   :  { %v1018_v55 = vsub.f32 %v1006_v45, %v1016_v53  ;;  %v1017_v56 = vmul.f32 0.03125, %v1015_v54 }
 0xcec   :  { %v1019_v57 = vsub.f32 %v1007_v50, %v1017_v56  ;;  %v1020_v58 = vmul.f32 %v1018_v55, %v1018_v55 }
 0xcee   :  { %v1022_v59 = vsel %vm71_vm0, %v1020_v58, 0.0  ;;  %v1021_v60 = vmul.f32 %v1019_v57, %v1019_v57 }
 0xcef   :  { %1023 = vadd.xlane.f32.xlu0 %v1022_v59 }
 0xcf0   :  { %v1025_v61 = vsel %vm71_vm0, %v1021_v60, 0.0 }
 0xcf1   :  { %1026 = vadd.xlane.f32.xlu1 %v1025_v61 }
 0xd7c   :  { %v1024_v0 = vpop.xlane.xlu0 %1023 }
 0xd7d   :  { %v1028_v1 = vmul.f32 0.03125, %v1024_v0 }
 0xd7e   :  { %v1027_v42 = vpop.xlane.xlu1 %1026 }
 0xd7f   :  { %v1030_v2 = vadd.f32 1e-12, %v1028_v1  ;;  %v1029_v3 = vmul.f32 0.03125, %v1027_v42 }
 0xd81   :  { %2623 = vrsqrt.f32 %v1030_v2  ;;  %v1031_v4 = vadd.f32 1e-12, %v1029_v3 }
 0xd83   :  { %2625 = vrsqrt.f32 %v1031_v4 }
 0xd8b   :  { %v2624_v5 = vpop.eup %2623 }
 0xd8c   :  { %v1034_v7 = vmul.f32 %v2624_v5, %v1018_v55  ;;  %v2579_v5 = vld [vmem:[%s3248_s6 + $0x10] sm:$0xff]  }
 0xd8d   :  { %v2626_v39 = vpop.eup %2625 }
 0xd8e   :  { %v1042_v8 = vmul.f32 %v2179_v6, %v1034_v7  ;;  %v1035_v9 = vmul.f32 %v2626_v39, %v1019_v57 }
 0xd90   :  { %v1043_v11 = vmul.f32 %v2179_v6, %v1035_v9  ;;  %v1050_v12 = vadd.f32 %v2180_v10, %v1042_v8 }
 0xd92   :  { %v1051_v13 = vadd.f32 %v2180_v10, %v1043_v11 }
 0xd94   :  { %v3026_v14 = vpack.c.bf16 %v1051_v13, %v1050_v12 }
 0xd96   :  { %2436 = vmatmul.mubr.msk.bf16.vlgmr.msra.gmra.mrb[24].mxu1 %vm71_vm0, %v3026_v14 }
 0xd97   :  { %2441 = vmatprep.mubr.msk.bf16.mxu1 %vm2684_vm1, %v2683_v15 }
 0xe69   :  { %v1115_v17 = vpop.f32.mrb[24].mxu1 }
 0xe6a   :  { %v1116_v18 = vadd.f32 %v2186_v16, %v1115_v17  ;;  %v2437_v19 = vpop.f32.mrb[25].mxu1 }
 0xe6b   :  { %v1118_v20 = vpop.f32.mrb[26].mxu1 }
 0xe6c   :  { %v3035_v21 = vpack.c.bf16 %v1116_v18, %v1116_v18  ;;  %v1119_v22 = vadd.f32 %v2186_v16, %v1118_v20  ;;  %v2438_v23 = vpop.f32.mrb[27].mxu1 }
 0xe6e   :  { %v3037_v24 = vpack.c.bf16 %v1119_v22, %v1119_v22  ;;  %1142 = vrot.lane.b32.xlu0 %v3035_v21, %s2685_s24 }
 0xe70   :  { %1191 = vrot.lane.b32.xlu1 %v3037_v24, %s2685_s24 }
 0xee0   :  { %v1143_v25 = vpop.permute.xlu0 %1142 }
 0xee1   :  { %v1148_v26 = vsel %vm217_vm2, %v1143_v25, 0 }
 0xee2   :  { %2440 = vmatpush3.bf16.xpose.msra.mxu1 %v1148_v26  ;;  %v1192_v27 = vpop.permute.xlu1 %1191 }
 0xee3   :  { %2445 = vmatprep.subr.bf16.mxu1 %v2683_v15  ;;  %v1197_v28 = vsel %vm217_vm2, %v1192_v27, 0 }
 0xee9   :  { %2442 = vmatmul.mubr.msk.bf16.vlgmr.msra.gmra.mrb[28].mxu1 %vm217_vm2, %v3035_v21 }
 0xeea   :  { %2446 = vmatpush3.bf16.xpose.msra.mxu1 %v1197_v28  ;;  %2447 = vmatprep.mubr.msk.bf16.mxu1 %vm2684_vm1, %v2683_v15 }
 0xeeb   :  { %2451 = vmatprep.subr.bf16.mxu1 %v2683_v15 }
 0xef1   :  { %2448 = vmatmul.mubr.msk.bf16.vlgmr.msra.gmra.mrb[32].mxu1 %vm217_vm2, %v3037_v24 }
 0xef2   :  { %2453 = vmatprep.mubr.msk.bf16.mxu1 %vm2684_vm1, %v2683_v15 }
 0xfbc   :  { %v1184_v29 = vpop.f32.mrb[28].mxu1 }
 0xfbd   :  { %v1185_v30 = vadd.f32 %v2858_v47, %v1184_v29  ;;  %v2443_v31 = vpop.f32.mrb[29].mxu1 }
 0xfbe   :  { %v1187_v32 = vpop.f32.mrb[30].mxu1 }
 0xfbf   :  { %v2444_v34 = vpop.f32.mrb[31].mxu1  ;;  %v1239_v35 = vsel %vm313_vm3, %v1185_v30, -inf }
 0xfc0   :  { %1240 = vmax.xlane.f32.xlu1 %v1239_v35 }
 0xfc4   :  { %v1233_v36 = vpop.f32.mrb[32].mxu1 }
 0xfc5   :  { %v1234_v37 = vadd.f32 %v2863_v49, %v1233_v36  ;;  %v2449_v38 = vpop.f32.mrb[33].mxu1 }
 0xfc6   :  { %v1236_v33 = vpop.f32.mrb[34].mxu1 }
 0xfc7   :  { %v2450_v40 = vpop.f32.mrb[35].mxu1  ;;  %v1242_v41 = vsel %vm313_vm3, %v1234_v37, -inf }
 0xfc8   :  { %1243 = vmax.xlane.f32.xlu0 %v1242_v41 }
0x104d   :  { %v1241_v43 = vpop.xlane.xlu1 %1240 }
0x104e   :  { %v1245_v44 = vsub.f32 %v1185_v30, %v1241_v43 }
0x1050   :  { %v1247_v45 = vmul.f32 1.442695, %v1245_v44 }
0x1052   :  { %2627 = vpow2.f32 %v1247_v45 }
0x1055   :  { %v1244_v46 = vpop.xlane.xlu0 %1243 }
0x1056   :  { %v1246_v48 = vsub.f32 %v1234_v37, %v1244_v46 }
0x1058   :  { %v1249_v50 = vmul.f32 1.442695, %v1246_v48 }
0x105a   :  { %2629 = vpow2.f32 %v1249_v50 }
0x105c   :  { %v2628_v51 = vpop.eup %2627 }
0x105d   :  { %v1251_v52 = vsel %vm313_vm3, %v2628_v51, 0.0 }
0x105e   :  { %1252 = vadd.xlane.f32.xlu0 %v1251_v52 }
0x1064   :  { %v2630_v53 = vpop.eup %2629 }
0x1065   :  { %v1254_v54 = vsel %vm313_vm3, %v2630_v53, 0.0 }
0x1066   :  { %1255 = vadd.xlane.f32.xlu1 %v1254_v54 }
0x1074   :  { %1263 = vrot.lane.b32.xlu0 %v3035_v21, %s2686_s4 }
0x1077   :  { %1311 = vrot.lane.b32.xlu1 %v3037_v24, %s2686_s4 }
0x1078   :  { %1412 = vrot.lane.b32.xlu0 %v3035_v21, %s2688_s30 }
0x107b   :  { %1414 = vrot.lane.b32.xlu1 %v3035_v21, %s2687_s29 }
0x107f   :  { %1464 = vrot.lane.b32.xlu1 %v3037_v24, %s2687_s29 }
0x1083   :  { %1462 = vrot.lane.b32.xlu1 %v3037_v24, %s2688_s30 }
0x10eb   :  { %v1253_v55 = vpop.xlane.xlu0 %1252 }
0x10ec   :  { %2631 = vrcp.f32 %v1253_v55  ;;  %v2580_v55 = vld [vmem:[%s3248_s6 + $0x18] sm:$0xff]  }
0x10ef   :  { %v1264_v56 = vpop.permute.xlu0 %1263 }
0x10f0   :  { %v1269_v57 = vsel %vm343_vm4, %v1264_v56, 0 }
0x10f1   :  { %2452 = vmatpush3.bf16.msra.mxu1 %v1269_v57 }
0x10f2   :  { %2463 = vmatprep.subr.bf16.mxu1 %v2683_v15 }
0x10f3   :  { %v1256_v58 = vpop.xlane.xlu1 %1255  ;;  %v1413_v4 = vpop.permute.xlu0 %1412 }
0x10f4   :  { %2633 = vrcp.f32 %v1256_v58 }
0x10f6   :  { %v2632_v59 = vpop.eup %2631 }
0x10f7   :  { %v1258_v60 = vmul.f32 %v2632_v59, %v2628_v51  ;;  %v1312_v61 = vpop.permute.xlu1 %1311 }
0x10f8   :  { %v1317_v62 = vsel %vm343_vm4, %v1312_v61, 0 }
0x10f9   :  { %2458 = vmatpush3.bf16.msra.mxu0 %v1317_v62  ;;  %v1261_v63 = vpack.c.bf16 %v1258_v60, %v1258_v60 }
0x10fa   :  { %2469 = vmatprep.subr.bf16.mxu0 %v2683_v15 }
0x10fb   :  { %2454 = vmatmul.mubr.msk.bf16.vlgmr.msra.gmra.mrb[36].mxu1 %vm313_vm3, %v1261_v63  ;;  %v1415_v42 = vpop.permute.xlu1 %1414 }
0x10fc   :  { %2465 = vmatprep.mubr.msk.bf16.mxu1 %vm2684_vm1, %v2683_v15  ;;  %v1420_v3 = vsel %vm217_vm2, %v1415_v42, 0  ;;  %2464 = vmatpush3.bf16.msra.mxu1 %v2579_v5  ;;  %v2195_v42 = vld [vmem:[%s3249_s7 + $0x1] ss:$0 sm:$0xff] }
0x10fd   :  { %2475 = vmatprep.subr.bf16.mxu1 %v2683_v15 }
0x10fe   :  { %v2634_v0 = vpop.eup %2633 }
0x10ff   :  { %v1260_v1 = vmul.f32 %v2634_v0, %v2630_v53  ;;  %v1465_v9 = vpop.permute.xlu1 %1464 }
0x1100   :  { %v1470_v16 = vsel %vm217_vm2, %v1465_v9, 0 }
0x1101   :  { %v1262_v2 = vpack.c.bf16 %v1260_v1, %v1260_v1  ;;  %v1129_v1 = vunpack.c.l.bf16 %v3026_v14 }
0x1103   :  { %2460 = vmatmul.mubr.msk.bf16.vlgmr.msra.gmra.mrb[24].mxu0 %vm313_vm3, %v1262_v2  ;;  %v1463_v22 = vpop.permute.xlu1 %1462  ;;  %v1130_v2 = vunpack.c.h.bf16 %v3026_v14 }
0x1104   :  { %2470 = vmatpush3.bf16.xpose.msra.mxu0 %v1420_v3  ;;  %2471 = vmatprep.mubr.msk.bf16.mxu0 %vm2684_vm1, %v2683_v15  ;;  %v1139_v3 = vadd.f32 %v2195_v42, %v1129_v1 }
0x1105   :  { %2481 = vmatprep.subr.bf16.mxu0 %v2683_v15 }
0x110b   :  { %2472 = vmatmul.mubr.msk.bf16.vlgmr.msra.gmra.mrb[28].mxu0 %vm217_vm2, %v1413_v4 }
0x110c   :  { %2483 = vmatprep.mubr.msk.bf16.mxu0 %vm2684_vm1, %v2683_v15 }
0x11ce   :  { %v1305_v6 = vpop.f32.mrb[36].mxu1 }
0x11cf   :  { %v2455_v7 = vpop.f32.mrb[37].mxu1 }
0x11d0   :  { %v1308_v39 = vpop.f32.mrb[38].mxu1  ;;  %v1140_v7 = vadd.f32 %v2195_v42, %v1130_v2 }
0x11d1   :  { %v2456_v8 = vpop.f32.mrb[39].mxu1 }
0x11d6   :  { %v1353_v10 = vpop.f32.mrb[24].mxu0 }
0x11d7   :  { %v1359_v11 = vpack.c.bf16 %v1353_v10, %v1305_v6  ;;  %v2461_v12 = vpop.f32.mrb[25].mxu0 }
0x11d8   :  { %v1356_v13 = vpop.f32.mrb[26].mxu0 }
0x11d9   :  { %v2462_v17 = vpop.f32.mrb[27].mxu0  ;;  %2466 = vmatmul.mubr.msk.bf16.vlgmr.msra.gmra.mrb[40].mxu1 %vm217_vm2, %v1359_v11 }
0x11da   :  { %2476 = vmatpush3.bf16.xpose.msra.mxu1 %v1470_v16  ;;  %2477 = vmatprep.mubr.msk.bf16.mxu1 %vm2684_vm1, %v2683_v15 }
0x11db   :  { %2487 = vmatprep.subr.bf16.mxu1 %v2683_v15 }
0x11de   :  { %v1456_v18 = vpop.f32.mrb[28].mxu0 }
0x11df   :  { %v1457_v19 = vadd.f32 %v2858_v47, %v1456_v18  ;;  %v2473_v20 = vpop.f32.mrb[29].mxu0 }
0x11e0   :  { %v1459_v23 = vpop.f32.mrb[30].mxu0 }
0x11e1   :  { %v2474_v25 = vpop.f32.mrb[31].mxu0  ;;  %2478 = vmatmul.mubr.msk.bf16.vlgmr.msra.gmra.mrb[44].mxu1 %vm217_vm2, %v1463_v22  ;;  %v1512_v26 = vsel %vm313_vm3, %v1457_v19, -inf }
0x11e2   :  { %1513 = vmax.xlane.f32.xlu0 %v1512_v26  ;;  %2489 = vmatprep.mubr.msk.bf16.mxu1 %vm2684_vm1, %v2683_v15  ;;  %v2581_v25 = vld [vmem:[%s3252_s10 + $0x10] sm:$0xff]   ;;  %v2582_v26 = vld [vmem:[%s3252_s10 + $0x18] sm:$0xff]  }
0x126f   :  { %v1514_v27 = vpop.xlane.xlu0 %1513 }
0x1270   :  { %v1518_v28 = vsub.f32 %v1457_v19, %v1514_v27 }
0x1272   :  { %v1520_v29 = vmul.f32 1.442695, %v1518_v28 }
0x1274   :  { %2635 = vpow2.f32 %v1520_v29 }
0x127e   :  { %v2636_v30 = vpop.eup %2635 }
0x127f   :  { %v1524_v31 = vsel %vm313_vm3, %v2636_v30, 0.0 }
0x1280   :  { %1525 = vadd.xlane.f32.xlu0 %v1524_v31 }
0x12b4   :  { %v1506_v47 = vpop.f32.mrb[44].mxu1 }
0x12b5   :  { %v1507_v32 = vadd.f32 %v2863_v49, %v1506_v47  ;;  %v2479_v34 = vpop.f32.mrb[45].mxu1 }
0x12b6   :  { %v1509_v35 = vpop.f32.mrb[46].mxu1  ;;  %v2210_v34 = vld [vmem:[%s3250_s8 + $0x1] ss:$0 sm:$0xff] }
0x12b7   :  { %v2480_v36 = vpop.f32.mrb[47].mxu1  ;;  %v1515_v37 = vsel %vm313_vm3, %v1507_v32, -inf }
0x12b8   :  { %1516 = vmax.xlane.f32.xlu1 %v1515_v37 }
0x12c9   :  { %1584 = vrot.lane.b32.xlu1 %v3037_v24, %s2689_s1 }
0x130d   :  { %v1526_v45 = vpop.xlane.xlu0 %1525 }
0x1345   :  { %v1517_v38 = vpop.xlane.xlu1 %1516 }
0x1346   :  { %v1519_v33 = vsub.f32 %v1507_v32, %v1517_v38 }
0x1348   :  { %v1522_v40 = vmul.f32 1.442695, %v1519_v33  ;;  %v2211_v33 = vld [vmem:[%s3251_s9 + $0x1] ss:$0 sm:$0xff] }
0x1349   :  { %v1585_v41 = vpop.permute.xlu1 %1584 }
0x134a   :  { %2637 = vpow2.f32 %v1522_v40  ;;  %v1590_v43 = vsel %vm343_vm4, %v1585_v41, 0 }
0x134b   :  { %2488 = vmatpush3.bf16.msra.mxu1 %v1590_v43  ;;  %2639 = vrcp.f32 %v1526_v45  ;;  %v2584_v45 = vld [vmem:[%s3254_s12 + $0x48] sm:$0xff]  }
0x134c   :  { %2493 = vmatprep.subr.bf16.mxu1 %v2683_v15 }
0x1354   :  { %v2638_v49 = vpop.eup %2637 }
0x1355   :  { %v1527_v44 = vsel %vm313_vm3, %v2638_v49, 0.0  ;;  %v2640_v24 = vpop.eup %2639 }
0x1356   :  { %1528 = vadd.xlane.f32.xlu0 %v1527_v44  ;;  %v1531_v48 = vmul.f32 %v2640_v24, %v2636_v30  ;;  %v2583_v44 = vld [vmem:[%s3254_s12 + $0x40] sm:$0xff]   ;;  %v2585_v24 = vld [vmem:[%s3254_s12 + $0x50] sm:$0xff]  }
0x1358   :  { %v1534_v52 = vpack.c.bf16 %v1531_v48, %v1531_v48  ;;  %v2587_v48 = vld [vmem:[%s3254_s12 + $0x60] sm:$0xff]  }
0x136c   :  { %1536 = vrot.lane.b32.xlu0 %v3035_v21, %s2689_s1 }
0x13e3   :  { %v1529_v46 = vpop.xlane.xlu0 %1528 }
0x13e4   :  { %2641 = vrcp.f32 %v1529_v46  ;;  %v2586_v46 = vld [vmem:[%s3254_s12 + $0x58] sm:$0xff]  }
0x13e7   :  { %v1537_v50 = vpop.permute.xlu0 %1536 }
0x13e8   :  { %v1542_v51 = vsel %vm343_vm4, %v1537_v50, 0  ;;  %v2588_v50 = vld [vmem:[%s3254_s12 + $0x68] sm:$0xff]  }
0x13e9   :  { %2482 = vmatpush3.bf16.msra.mxu0 %v1542_v51  ;;  %v2589_v51 = vld [vmem:[%s3254_s12 + $0x70] sm:$0xff]  }
0x13ea   :  { %2499 = vmatprep.subr.bf16.mxu0 %v2683_v15 }
0x13ec   :  { %2484 = vmatmul.mubr.msk.bf16.vlgmr.msra.gmra.mrb[32].mxu0 %vm313_vm3, %v1534_v52  ;;  %v2590_v52 = vld [vmem:[%s3254_s12 + $0x78] sm:$0xff]  }
0x13ed   :  { %2503 = vmatprep.mubr.msk.bf16.mxu0 %vm2684_vm1, %v2683_v15  ;;  %2500 = vmatpush3.bf16.msra.mxu0 %v2581_v25 }
0x13ee   :  { %v2642_v53 = vpop.eup %2641  ;;  %2501 = vmatprep.subr.bf16.mxu0 %v2683_v15 }
0x13ef   :  { %v1533_v21 = vmul.f32 %v2642_v53, %v2638_v49  ;;  %v2217_v53 = vld [vmem:[%s3253_s11 + $0x1] ss:$0 sm:$0xff] }
0x13f1   :  { %v1535_v54 = vpack.c.bf16 %v1533_v21, %v1533_v21  ;;  %2502 = vmatpush3.bf16.msra.mxu0 %v2582_v26 }
0x13f2   :  { %2507 = vmatprep.subr.bf16.mxu0 %v2683_v15 }
0x13f3   :  { %2490 = vmatmul.mubr.msk.bf16.vlgmr.msra.gmra.mrb[48].mxu1 %vm313_vm3, %v1535_v54 }
0x13f4   :  { %2495 = vmatprep.mubr.msk.bf16.mxu1 %vm2684_vm1, %v2683_v15  ;;  %2494 = vmatpush3.bf16.msra.mxu1 %v2580_v55 }
0x13f5   :  { %2527 = vmatprep.subr.bf16.mxu1 %v2683_v15 }
0x14bf   :  { %v1578_v56 = vpop.f32.mrb[32].mxu0 }
0x14c0   :  { %v2485_v57 = vpop.f32.mrb[33].mxu0 }
0x14c1   :  { %v1581_v58 = vpop.f32.mrb[34].mxu0 }
0x14c2   :  { %v2486_v59 = vpop.f32.mrb[35].mxu0 }
0x14c6   :  { %v1626_v60 = vpop.f32.mrb[48].mxu1 }
0x14c7   :  { %v1632_v61 = vpack.c.bf16 %v1626_v60, %v1578_v56  ;;  %v2491_v62 = vpop.f32.mrb[49].mxu1 }
0x14c8   :  { %v1629_v63 = vpop.f32.mrb[50].mxu1 }
0x14c9   :  { %v2492_v0 = vpop.f32.mrb[51].mxu1  ;;  %2496 = vmatmul.mubr.msk.bf16.vlgmr.msra.gmra.mrb[40].mxu1 %vm217_vm2, %v1632_v61 }
0x14ca   :  { %2531 = vmatprep.mubr.msk.bf16.mxu1 %vm2684_vm1, %v2683_v15 }
0x159c   :  { %v1676_v4 = vpop.f32.mrb[40].mxu1 }
0x159d   :  { %v2545_v5 = vadd.f32 %v1676_v4, %v1139_v3  ;;  %v2497_v6 = vpop.f32.mrb[41].mxu1 }
0x159e   :  { %v1679_v39 = vpop.f32.mrb[42].mxu1 }
0x159f   :  { %v2546_v8 = vadd.f32 %v1679_v39, %v1140_v7  ;;  %v2498_v9 = vpop.f32.mrb[43].mxu1  ;;  %v1689_v10 = vsel %vm71_vm0, %v2545_v5, 0.0 }
0x15a0   :  { %1690 = vadd.xlane.f32.xlu1 %v1689_v10 }
0x15a1   :  { %v1692_v11 = vsel %vm71_vm0, %v2546_v8, 0.0 }
0x15a2   :  { %1693 = vadd.xlane.f32.xlu0 %v1692_v11 }
0x162d   :  { %v1691_v12 = vpop.xlane.xlu1 %1690 }
0x162e   :  { %v1695_v13 = vmul.f32 0.03125, %v1691_v12  ;;  %v2238_v12 = vld [vmem:[%s3255_s13 + $0x1] ss:$0 sm:$0xff] }
0x162f   :  { %v1694_v16 = vpop.xlane.xlu0 %1693 }
0x1630   :  { %v1697_v17 = vsub.f32 %v2545_v5, %v1695_v13  ;;  %v1696_v18 = vmul.f32 0.03125, %v1694_v16 }
0x1632   :  { %v1698_v14 = vsub.f32 %v2546_v8, %v1696_v18  ;;  %v1699_v19 = vmul.f32 %v1697_v17, %v1697_v17 }
0x1634   :  { %v1701_v20 = vsel %vm71_vm0, %v1699_v19, 0.0  ;;  %v1700_v22 = vmul.f32 %v1698_v14, %v1698_v14 }
0x1635   :  { %1702 = vadd.xlane.f32.xlu0 %v1701_v20 }
0x1636   :  { %v1704_v23 = vsel %vm71_vm0, %v1700_v22, 0.0 }
0x1637   :  { %1705 = vadd.xlane.f32.xlu1 %v1704_v23 }
0x16c2   :  { %v1703_v27 = vpop.xlane.xlu0 %1702 }
0x16c3   :  { %v1707_v28 = vmul.f32 0.03125, %v1703_v27 }
0x16c4   :  { %v1706_v29 = vpop.xlane.xlu1 %1705 }
0x16c5   :  { %v1709_v30 = vadd.f32 1e-12, %v1707_v28  ;;  %v1708_v31 = vmul.f32 0.03125, %v1706_v29 }
0x16c7   :  { %2643 = vrsqrt.f32 %v1709_v30  ;;  %v1710_v47 = vadd.f32 1e-12, %v1708_v31 }
0x16c9   :  { %2645 = vrsqrt.f32 %v1710_v47 }
0x16d1   :  { %v2644_v32 = vpop.eup %2643 }
0x16d2   :  { %v1713_v35 = vmul.f32 %v2644_v32, %v1697_v17 }
0x16d3   :  { %v2646_v36 = vpop.eup %2645 }
0x16d4   :  { %v1721_v37 = vmul.f32 %v2210_v34, %v1713_v35  ;;  %v1714_v38 = vmul.f32 %v2646_v36, %v1698_v14 }
0x16d6   :  { %v1722_v40 = vmul.f32 %v2210_v34, %v1714_v38  ;;  %v1729_v41 = vadd.f32 %v2211_v33, %v1721_v37  ;;  %v2591_v38 = vld [vmem:[%s3258_s16] sm:$0xff]  }
0x16d7   :  { %2528 = vmatpush3.bf16.msra.mxu1 %v2591_v38 }
0x16d8   :  { %v1730_v43 = vadd.f32 %v2211_v33, %v1722_v40  ;;  %v2592_v33 = vld [vmem:[%s3258_s16 + $0x8] sm:$0xff]   ;;  %2529 = vmatprep.subr.bf16.mxu1 %v2683_v15 }
0x16da   :  { %v3150_v49 = vpack.c.bf16 %v1730_v43, %v1729_v41 }
0x16db   :  { %2530 = vmatpush3.bf16.msra.mxu1 %v2592_v33 }
0x16dc   :  { %2504 = vmatmul.mubr.msk.bf16.vlgmr.msra.gmra.mrb[36].mxu0 %vm71_vm0, %v3150_v49  ;;  %v1934_v18 = vunpack.c.l.bf16 %v3150_v49  ;;  %v1935_v23 = vunpack.c.h.bf16 %v3150_v49  ;;  %2535 = vmatprep.subr.bf16.mxu1 %v2683_v15 }
0x16dd   :  { %2523 = vmatprep.mubr.msk.bf16.mxu0 %vm2684_vm1, %v2683_v15  ;;  %2508 = vmatpush3.bf16.msra.mxu0 %v2583_v44 }
0x16de   :  { %2509 = vmatprep.subr.bf16.mxu0 %v2683_v15 }
0x16e1   :  { %2510 = vmatpush3.bf16.msra.mxu0 %v2584_v45 }
0x16e2   :  { %2511 = vmatprep.subr.bf16.mxu0 %v2683_v15 }
0x16e5   :  { %2512 = vmatpush3.bf16.msra.mxu0 %v2585_v24 }
0x16e6   :  { %2513 = vmatprep.subr.bf16.mxu0 %v2683_v15 }
0x16e9   :  { %2514 = vmatpush3.bf16.msra.mxu0 %v2586_v46  ;;  %v2249_v46 = vld [vmem:[%s3256_s14 + $0x1] ss:$0 sm:$0xff] }
0x16ea   :  { %2515 = vmatprep.subr.bf16.mxu0 %v2683_v15 }
0x16ed   :  { %2516 = vmatpush3.bf16.msra.mxu0 %v2587_v48 }
0x16ee   :  { %2517 = vmatprep.subr.bf16.mxu0 %v2683_v15 }
0x16f1   :  { %2518 = vmatpush3.bf16.msra.mxu0 %v2588_v50 }
0x16f2   :  { %2519 = vmatprep.subr.bf16.mxu0 %v2683_v15 }
0x16f5   :  { %2520 = vmatpush3.bf16.msra.mxu0 %v2589_v51 }
0x16f6   :  { %2521 = vmatprep.subr.bf16.mxu0 %v2683_v15 }
0x16f9   :  { %2522 = vmatpush3.bf16.msra.mxu0 %v2590_v52 }
0x17af   :  { %v1794_v21 = vpop.f32.mrb[36].mxu0 }
0x17b0   :  { %v1795_v54 = vadd.f32 %v2217_v53, %v1794_v21  ;;  %v2505_v55 = vpop.f32.mrb[37].mxu0 }
0x17b1   :  { %v1797_v56 = vpop.f32.mrb[38].mxu0 }
0x17b2   :  { %v1801_v57 = vmul.f32 %v1795_v54, %v1795_v54  ;;  %v1798_v58 = vadd.f32 %v2217_v53, %v1797_v56  ;;  %v2506_v59 = vpop.f32.mrb[39].mxu0  ;;  %v2250_v53 = vld [vmem:[%s3257_s15 + $0x1] ss:$0 sm:$0xff] }
0x17b3   :  { %v2251_v59 = vld [vmem:[%s3259_s17] ss:$0 sm:$0xff]  ;;  %s2690_s17 = smov [#allocation2]  }
0x17b4   :  { %v1803_v60 = vmul.f32 %v1801_v57, %v1795_v54  ;;  %v1802_v61 = vmul.f32 %v1798_v58, %v1798_v58  ;;  %v2593_v57 = vld [vmem:[%s3260_s18] sm:$0xff]   ;;  %s2135_s24 = sshll.u32 %s2690_s17, 4  ;;  %s2136_s24 = int_to_ptr.vmem [resolvable:$true] %s2135_s24 }
0x17b5   :  { %s2659_s4 = scalar_lea.vmem %s2136_s24, 32  ;;  %p2664_p1 = scmp.lt.s32.totalorder %s2136_s24, %s2136_s24 }
0x17b6   :  { %v1805_v62 = vmul.f32 0.044715, %v1803_v60  ;;  %v1804_v63 = vmul.f32 %v1802_v61, %v1798_v58  ;;  %p2660_p0 = scmp.ne.s32.totalorder %s2136_s24, %s2659_s4  ;;  %p2665_p2 = scmp.lt.s32.totalorder %s2659_s4, %s2659_s4 }
0x17b8   :  { %v1807_v0 = vadd.f32 %v1805_v62, %v1795_v54  ;;  %v1806_v1 = vmul.f32 0.044715, %v1804_v63  ;;  %p2666_p3 = por %p2665_p2, %p2664_p1 }
0x17ba   :  { %v1809_v42 = vmul.f32 0.7978846, %v1807_v0  ;;  %v1808_v2 = vadd.f32 %v1806_v1, %v1798_v58  ;;  %p2667_p4 = pnand %p2666_p3, %p2660_p0 }
0x17bc   :  { %2647 = vtanh.f32 %v1809_v42  ;;  %v1810_v3 = vmul.f32 0.7978846, %v1808_v2 }
0x17be   :  { %2649 = vtanh.f32 %v1810_v3 }
0x17c6   :  { %v2648_v4 = vpop.eup %2647 }
0x17c7   :  { %v1813_v5 = vadd.f32 1.0, %v2648_v4 }
0x17c8   :  { %v2650_v6 = vpop.eup %2649 }
0x17c9   :  { %v1815_v7 = vmul.f32 0.5, %v1813_v5  ;;  %v1814_v39 = vadd.f32 1.0, %v2650_v6  ;;  %v2255_v5 = vld [vmem:[%s3261_s19] ss:$0 sm:$0xff] }
0x17cb   :  { %v1816_v8 = vmul.f32 0.5, %v1814_v39  ;;  %v1817_v9 = vmul.f32 %v1815_v7, %v1795_v54 }
0x17cd   :  { %v1818_v10 = vmul.f32 %v1816_v8, %v1798_v58  ;;  %v2594_v58 = vld [vmem:[%s3260_s18 + $0x8] sm:$0xff]  }
0x17cf   :  { %v1836_v11 = vpack.c.bf16 %v1818_v10, %v1817_v9 }
0x17d1   :  { %2524 = vmatmul.mubr.bf16.vlgmr.msra.gmra.mrb[40].mxu0 %v1836_v11 }
0x18a4   :  { %v1927_v13 = vpop.f32.mrb[40].mxu0 }
0x18a5   :  { %v1928_v16 = vadd.f32 %v2238_v12, %v1927_v13  ;;  %v2525_v17 = vpop.f32.mrb[41].mxu0 }
0x18a6   :  { %v1930_v14 = vpop.f32.mrb[42].mxu0 }
0x18a7   :  { %v1931_v19 = vadd.f32 %v2238_v12, %v1930_v14  ;;  %v2526_v20 = vpop.f32.mrb[43].mxu0  ;;  %v1936_v22 = vadd.f32 %v1934_v18, %v1928_v16 }
0x18a9   :  { %v1942_v25 = vsel %vm71_vm0, %v1936_v22, 0.0  ;;  %v1937_v26 = vadd.f32 %v1935_v23, %v1931_v19 }
0x18aa   :  { %1943 = vadd.xlane.f32.xlu0 %v1942_v25 }
0x18ab   :  { %v1945_v27 = vsel %vm71_vm0, %v1937_v26, 0.0 }
0x18ac   :  { %1946 = vadd.xlane.f32.xlu1 %v1945_v27 }
0x1937   :  { %v1944_v28 = vpop.xlane.xlu0 %1943 }
0x1938   :  { %v1948_v29 = vmul.f32 0.03125, %v1944_v28 }
0x1939   :  { %v1947_v30 = vpop.xlane.xlu1 %1946 }
0x193a   :  { %v1950_v31 = vsub.f32 %v1936_v22, %v1948_v29  ;;  %v1949_v47 = vmul.f32 0.03125, %v1947_v30 }
0x193c   :  { %v1951_v32 = vsub.f32 %v1937_v26, %v1949_v47  ;;  %v1952_v34 = vmul.f32 %v1950_v31, %v1950_v31 }
0x193e   :  { %v1954_v35 = vsel %vm71_vm0, %v1952_v34, 0.0  ;;  %v1953_v36 = vmul.f32 %v1951_v32, %v1951_v32 }
0x193f   :  { %1955 = vadd.xlane.f32.xlu0 %v1954_v35 }
0x1940   :  { %v1957_v37 = vsel %vm71_vm0, %v1953_v36, 0.0 }
0x1941   :  { %1958 = vadd.xlane.f32.xlu1 %v1957_v37 }
0x19cc   :  { %v1956_v40 = vpop.xlane.xlu0 %1955 }
0x19cd   :  { %v1960_v41 = vmul.f32 0.03125, %v1956_v40 }
0x19ce   :  { %v1959_v43 = vpop.xlane.xlu1 %1958 }
0x19cf   :  { %v1962_v49 = vadd.f32 1e-12, %v1960_v41  ;;  %v1961_v44 = vmul.f32 0.03125, %v1959_v43 }
0x19d1   :  { %2651 = vrsqrt.f32 %v1962_v49  ;;  %v1963_v45 = vadd.f32 1e-12, %v1961_v44 }
0x19d3   :  { %2653 = vrsqrt.f32 %v1963_v45 }
0x19db   :  { %v2652_v24 = vpop.eup %2651 }
0x19dc   :  { %v1966_v48 = vmul.f32 %v2652_v24, %v1950_v31 }
0x19dd   :  { %v2654_v50 = vpop.eup %2653 }
0x19de   :  { %v1974_v51 = vmul.f32 %v2249_v46, %v1966_v48  ;;  %v1967_v52 = vmul.f32 %v2654_v50, %v1951_v32 }
0x19e0   :  { %v1975_v21 = vmul.f32 %v2249_v46, %v1967_v52  ;;  %v1982_v54 = vadd.f32 %v2250_v53, %v1974_v51 }
0x19e2   :  { %v1983_v55 = vadd.f32 %v2250_v53, %v1975_v21 }
0x19e4   :  { %v1984_v56 = vpack.c.bf16 %v1983_v55, %v1982_v54 }
0x19e6   :  { %2532 = vmatmul.mubr.msk.bf16.vlgmr.msra.gmra.mrb[52].mxu1 %vm71_vm0, %v1984_v56 }
0x19e7   :  { %2539 = vmatprep.mubr.msk.bf16.mxu1 %vm2684_vm1, %v2683_v15  ;;  %2536 = vmatpush3.bf16.msra.mxu1 %v2593_v57 }
0x19e8   :  { %2537 = vmatprep.subr.bf16.mxu1 %v2683_v15 }
0x19eb   :  { %2538 = vmatpush3.bf16.msra.mxu1 %v2594_v58 }
0x1ab9   :  { %v2045_v60 = vpop.f32.mrb[52].mxu1 }
0x1aba   :  { %v2046_v61 = vadd.f32 %v2251_v59, %v2045_v60  ;;  %v2533_v62 = vpop.f32.mrb[53].mxu1 }
0x1abb   :  { %v2048_v63 = vpop.f32.mrb[54].mxu1 }
0x1abc   :  { %v2049_v0 = vadd.f32 %v2251_v59, %v2048_v63  ;;  %v2534_v1 = vpop.f32.mrb[55].mxu1  ;;  %2655 = vtanh.f32 %v2046_v61 }
0x1abe   :  { %2657 = vtanh.f32 %v2049_v0 }
0x1ac6   :  { %v2656_v42 = vpop.eup %2655 }
0x1ac8   :  { %v2658_v2 = vpop.eup %2657 }
0x1ac9   :  { %v2058_v3 = vpack.c.bf16 %v2658_v2, %v2656_v42 }
0x1acb   :  { %2540 = vmatmul.mubr.msk.bf16.vlgmr.msra.gmra.mrb[56].mxu1 %vm71_vm0, %v2058_v3 }
0x1b9e   :  { %v2115_v4 = vpop.f32.mrb[56].mxu1 }
0x1b9f   :  { %v2541_v15 = vpop.f32.mrb[57].mxu1  ;;  %v2116_v8 = vadd.f32 %v2255_v5, %v2115_v4 }
0x1ba0   :  { %v2118_v6 = vpop.f32.mrb[58].mxu1 }
0x1ba1   :  { %v2119_v7 = vadd.f32 %v2255_v5, %v2118_v6  ;;  %v2542_v39 = vpop.f32.mrb[59].mxu1 }
0x1ba3   :  { %v2124_v9 = vrot.slane %v2119_v7, 7 }
0x1ba5   :  { %v2126_v10 = vsel %vm2125_vm5, %v2124_v9, %v2116_v8 }
0x1ba6   :  { %2128 = vst [vmem:[#allocation2] sm:$0x3] %v2126_v10 }
0x1ba7   :  { %2670 = shalt.err (!%p2667_p4)
}
0x1ba8   :  { %s2671_s6 = scalar_lea.hbm %s3262_s20, 32 }
0x1ba9   :  { %p2672_p5 = scmp.ne.s32.totalorder %s3262_s20, %s2671_s6  ;;  %p2675_p6 = scmp.lt.u32.totalorder %s2671_s6, %s3262_s20 }
0x1bab   :  { %p2677_p7 = pnand %p2675_p6, %p2672_p5 }
0x1bad   :  { %2680 = shalt.err (!%p2677_p7)
}
0x1bae   :  { %2138 = dma.vmem_to_hbm [thread:$0]  %s2136_s24, 32, %s3262_s20, [#allocation3]  }
0x1baf   :  { %2681 = dma.done.wait [#allocation3], 32  }
0x1bb0   :  { %2682 = vsyncadd [#allocation3], 4294967264 }
0x1bb1   :  { %2142 = vsyncpa [#allocation3], 1 }

</bundles_post_ra>
